<compile_context>
chip_gen: v5e
topology: v5e:2x2
jax: 0.10.0
libtpu: 0.0.40
codegen_flags: <defaults>
</compile_context>

<pallas_src>
import functools

import jax
import jax.numpy as jnp
from jax.experimental import pallas as pl
from jax.experimental.pallas import tpu as pltpu


# --------------------------- fused decoder kernel -----------------------------
def _decoder_kernel(T, B, L, H,
                    xes_ref, w_ih_ref, w_hh_ref, b_ref, emb_ref, h0_ref, c0_ref,
                    scores_ref, preds_ref, hT_ref, cT_ref,
                    pregates_ref, htop_ref):
    H4 = 4 * H
    V = emb_ref.shape[0]
    neg = jnp.finfo(jnp.float32).min          # finite mask value (no -inf)

    # Weights arrive already bf16 (cast once in the wrapper); hoist the
    # per-layer loads out of the unrolled time loop.
    w_ih = [w_ih_ref[l] for l in range(L)]    # each (E or H, 4H) bf16
    w_hh = [w_hh_ref[l] for l in range(L)]    # each (H, 4H)      bf16

    # ---- layer-0 input gates for ALL timesteps: one batched MXU matmul ----
    pre0 = jnp.dot(xes_ref[...], w_ih[0], preferred_element_type=jnp.float32)
    pregates_ref[...] = pre0 + jnp.broadcast_to(b_ref[0], (T * B, H4))

    # Pre-broadcast the remaining biases once (no broadcast_in_dim per step).
    biases = [jnp.broadcast_to(b_ref[l], (B, H4)) for l in range(1, L)]

    def step(t, carry):
        hs, cs = carry                        # tuples of (B, H) f32 per layer
        row = t * B
        new_h, new_c = [], []
        x = None
        for layer in range(L):                # static unroll (L == 2)
            h_b = hs[layer].astype(jnp.bfloat16)
            if layer == 0:
                # Input contribution already precomputed; only the recurrent
                # matmul sits on the serial chain.
                gates = (pregates_ref[pl.ds(row, B), :]
                         + jnp.dot(h_b, w_hh[0],
                                   preferred_element_type=jnp.float32))
            else:
                gates = (jnp.dot(x.astype(jnp.bfloat16), w_ih[layer],
                                 preferred_element_type=jnp.float32)
                         + jnp.dot(h_b, w_hh[layer],
                                   preferred_element_type=jnp.float32)
                         + biases[layer - 1])
            # Full-vreg activations (gate order i, f, g, o), sliced afterwards.
            sig = jax.nn.sigmoid(gates)       # one EUP push over (B, 4H)
            th = jnp.tanh(gates)              # one EUP push over (B, 4H)
            i = sig[:, 0:H]
            f = sig[:, H:2 * H]
            o = sig[:, 3 * H:4 * H]
            g = th[:, 2 * H:3 * H]
            c_new = f * cs[layer] + i * g     # f32 cell math, f32 carries
            h_new = o * jnp.tanh(c_new)
            new_h.append(h_new)
            new_c.append(c_new)
            x = h_new                         # input to next layer
        # Stash top-layer hidden; projection/argmax happen once after the loop.
        htop_ref[pl.ds(row, B), :] = x
        return tuple(new_h), tuple(new_c)

    h0 = tuple(h0_ref[l] for l in range(L))
    c0 = tuple(c0_ref[l] for l in range(L))
    # TODO(synk): cap the unroll (e.g. unroll=4) if T grows beyond ~16-32.
    hs, cs = jax.lax.fori_loop(0, T, step, (h0, c0), unroll=True)
    for l in range(L):
        hT_ref[l] = hs[l]
        cT_ref[l] = cs[l]

    # ---- shared-weight Linear + masked argmax, hoisted out of the loop ----
    # scores = h_top @ Emb^T, contracted on E in-kernel (no transposed
    # embedding ever materialized in HBM).
    h_flat = htop_ref[...].astype(jnp.bfloat16)                   # (T*B, H)
    s = jax.lax.dot_general(h_flat, emb_ref[...],
                            dimension_numbers=(((1,), (1,)), ((), ())),
                            preferred_element_type=jnp.float32)   # (T*B, V)
    scores_ref[...] = s                                           # one dense store

    # Masked argmax excluding padding column 0 (first-occurrence tie-break).
    col = jax.lax.broadcasted_iota(jnp.int32, s.shape, 1)
    masked = jnp.where(col == 0, neg, s)
    m = jnp.max(masked, axis=1, keepdims=True)
    first_idx = jnp.min(jnp.where(masked == m, col, V), axis=1, keepdims=True)
    preds_ref[...] = first_idx.astype(jnp.int32)                  # (T*B, 1)


def _decoder_call(T, xes_flat, w_ih, w_hh, bias, emb, h0, c0):
    """xes_flat: (T*B, E) time-major flattened bf16 embedded inputs."""
    TB, _ = xes_flat.shape
    B = TB // T
    L, _, H4 = w_ih.shape
    H = H4 // 4
    V = emb.shape[0]

    # TODO(synk): at production vocab sizes, tile the projection over V with a
    # streaming max/argmax accumulator (V-tile sized for v7x's 64 MiB VMEM),
    # mark that axis "parallel" for the 2 TCs, emit bf16 scores, and write
    # batch-major directly to avoid the wrapper transpose of the largest
    # tensor.  At these shapes everything fits VMEM so one fused call wins.
    kernel = functools.partial(_decoder_kernel, T, B, L, H)
    vmem = lambda: pl.BlockSpec(memory_space=pltpu.MemorySpace.VMEM)
    return pl.pallas_call(
        kernel,
        out_shape=(jax.ShapeDtypeStruct((T * B, V), jnp.float32),
                   jax.ShapeDtypeStruct((T * B, 1), jnp.int32),
                   jax.ShapeDtypeStruct((L, B, H), jnp.float32),
                   jax.ShapeDtypeStruct((L, B, H), jnp.float32)),
        in_specs=[vmem() for _ in range(7)],
        out_specs=tuple(vmem() for _ in range(4)),
        scratch_shapes=[pltpu.VMEM((T * B, H4), jnp.float32),   # layer-0 pregates
                        pltpu.VMEM((T * B, H), jnp.float32)],   # top-layer h
    )(xes_flat, w_ih, w_hh, bias, emb, h0, c0)


# ------------------------------ Decoder wrapper -------------------------------
def decoder_forward(params, xs, hidden, encoder_output=None, attn_mask=None):
    """Mirrors Decoder.forward with defaults (attn='none', numsoftmax=1, topk=1)."""
    del encoder_output, attn_mask                 # attention == 'none'
    emb_w = params["emb_w"]                       # (V, E), row 0 zeroed (padding_idx)
    h0, c0 = hidden                               # each (L, B, H)
    B, T = xs.shape
    L, _, H4 = params["w_ih_t"].shape
    H = H4 // 4
    V = emb_w.shape[0]

    # Weights handed to the kernel already bf16 (halves weight DMA / VMEM).
    emb_b = emb_w.astype(jnp.bfloat16)
    w_ih_b = params["w_ih_t"].astype(jnp.bfloat16)
    w_hh_b = params["w_hh_t"].astype(jnp.bfloat16)

    # Embedding lookup directly time-major + flattened (no (B,T,E) transpose
    # pass, no in-kernel reshape).  in_dropout is identity (eval).
    xes_flat = jnp.take(emb_b, xs.T, axis=0).reshape(T * B, -1)

    scores_flat, preds_flat, hT, cT = _decoder_call(
        T, xes_flat, w_ih_b, w_hh_b, params["b"], emb_b, h0, c0)

    # o2e identity (hidden_size == emb_size); out_dropout identity (eval).
    scores = jnp.transpose(scores_flat.reshape(T, B, V), (1, 0, 2))   # (B, T, V)
    preds = preds_flat.reshape(T, B).T                                # (B, T)
    return preds, scores, (hT, cT)


# --------------------------- pure-JAX f32 reference ---------------------------
def _reference_forward(emb_w, w_ih_t, w_hh_t, b, xs, h0, c0):
    L, _, H4 = w_ih_t.shape
    H = H4 // 4
    xes = jnp.take(emb_w, xs, axis=0)                  # (B, T, E)
    hs = [h0[l] for l in range(L)]
    cs = [c0[l] for l in range(L)]
    outs = []
    for t in range(xs.shape[1]):
        x = xes[:, t, :]
        for l in range(L):
            gates = x @ w_ih_t[l] + hs[l] @ w_hh_t[l] + b[l]
            i = jax.nn.sigmoid(gates[:, :H])
            f = jax.nn.sigmoid(gates[:, H:2 * H])
            g = jnp.tanh(gates[:, 2 * H:3 * H])
            o = jax.nn.sigmoid(gates[:, 3 * H:])
            cs[l] = f * cs[l] + i * g
            hs[l] = o * jnp.tanh(cs[l])
            x = hs[l]
        outs.append(x)
    out = jnp.stack(outs, axis=1)                      # (B, T, H)
    scores = out @ emb_w.T                             # (B, T, V)
    preds = jnp.argmax(scores[:, :, 1:], axis=2) + 1
    return preds, scores, (jnp.stack(hs), jnp.stack(cs))


# ------------------------------------ main ------------------------------------
if __name__ == "__main__":
    # Small shapes consistent with the module (emb_size == hidden_size).
    B, T = 8, 8          # batch, decode sequence length
    E = H = 32           # emb_size == hidden_size (default) -> o2e identity
    L = 2                # num_layers
    V = 64               # num_features (vocab)

    key = jax.random.PRNGKey(0)
    ks = jax.random.split(key, 10)

    emb_w = 0.1 * jax.random.normal(ks[0], (V, E), jnp.float32)
    emb_w = emb_w.at[0].set(0.0)                  # padding_idx=0 row zeroed

    scale = 1.0 / jnp.sqrt(jnp.float32(H))
    # PyTorch LSTM weights, pre-transposed (gate order i, f, g, o).
    w_ih_t = scale * jax.random.normal(ks[1], (L, E, 4 * H), jnp.float32)
    w_hh_t = scale * jax.random.normal(ks[2], (L, H, 4 * H), jnp.float32)
    b_ih = scale * jax.random.normal(ks[3], (L, 1, 4 * H), jnp.float32)
    b_hh = scale * jax.random.normal(ks[4], (L, 1, 4 * H), jnp.float32)
    b_sum = b_ih + b_hh                           # pre-added biases (L, 1, 4H)

    params = dict(emb_w=emb_w, w_ih_t=w_ih_t, w_hh_t=w_hh_t, b=b_sum)

    xs = jax.random.randint(ks[5], (B, T), 1, V, dtype=jnp.int32)   # token ids
    h0 = 0.1 * jax.random.normal(ks[6], (L, B, H), jnp.float32)
    c0 = 0.1 * jax.random.normal(ks[7], (L, B, H), jnp.float32)
    enc_out = 0.1 * jax.random.normal(ks[8], (B, T, H), jnp.float32)  # unused (attn='none')

    preds, scores, (hT, cT) = jax.jit(decoder_forward)(params, xs, (h0, c0), enc_out)
    jax.block_until_ready((preds, scores, hT, cT))

    # Shape / semantics checks.
    assert preds.shape == (B, T) and scores.shape == (B, T, V)
    assert hT.shape == (L, B, H) and cT.shape == (L, B, H)
    assert int(preds.min()) >= 1                     # padding index 0 never predicted

    # In-kernel masked argmax must agree exactly with argmax of its own scores.
    own_preds = jnp.argmax(scores[:, :, 1:], axis=2) + 1
    assert bool(jnp.all(preds == own_preds))

    # bf16 MXU operands -> loose tolerance vs the f32 pure-JAX reference.
    r_preds, r_scores, (r_hT, r_cT) = _reference_forward(
        emb_w, w_ih_t, w_hh_t, b_sum, xs, h0, c0)
    assert float(jnp.max(jnp.abs(scores - r_scores))) < 1e-1
    assert float(jnp.max(jnp.abs(hT - r_hT))) < 5e-2
    assert float(jnp.max(jnp.abs(cT - r_cT))) < 5e-2

    # TODO(synk): dropout layers are identity (eval mode); no stochastic dropout kernel.
    print("KERNEL_OK")
</pallas_src>

<mosaic_0001>
module attributes {stable_mosaic.version = 11 : i64} {
  func.func @_decoder_kernel(%arg0: memref<64x32xbf16, #tpu.memory_space<vmem>>, %arg1: memref<2x32x128xbf16, #tpu.memory_space<vmem>>, %arg2: memref<2x32x128xbf16, #tpu.memory_space<vmem>>, %arg3: memref<2x1x128xf32, #tpu.memory_space<vmem>>, %arg4: memref<64x32xbf16, #tpu.memory_space<vmem>>, %arg5: memref<2x8x32xf32, #tpu.memory_space<vmem>>, %arg6: memref<2x8x32xf32, #tpu.memory_space<vmem>>, %arg7: memref<64x64xf32, #tpu.memory_space<vmem>>, %arg8: memref<64x1xi32, #tpu.memory_space<vmem>>, %arg9: memref<2x8x32xf32, #tpu.memory_space<vmem>>, %arg10: memref<2x8x32xf32, #tpu.memory_space<vmem>>, %arg11: memref<64x128xf32, #tpu.memory_space<vmem>>, %arg12: memref<64x32xf32, #tpu.memory_space<vmem>>) attributes {dimension_semantics = [], scalar_prefetch = 0 : i64, scratch_operands = 2 : i64, tpu.core_type = #tpu.core_type<tc>} {
    %c0 = arith.constant 0 : index
    %c0_0 = arith.constant 0 : index
    %c0_1 = arith.constant 0 : index
    %0 = vector.load %arg1[%c0, %c0_0, %c0_1] : memref<2x32x128xbf16, #tpu.memory_space<vmem>>, vector<1x32x128xbf16>
    %1 = vector.shape_cast %0 : vector<1x32x128xbf16> to vector<32x128xbf16>
    %c1 = arith.constant 1 : index
    %c0_2 = arith.constant 0 : index
    %c0_3 = arith.constant 0 : index
    %2 = vector.load %arg1[%c1, %c0_2, %c0_3] : memref<2x32x128xbf16, #tpu.memory_space<vmem>>, vector<1x32x128xbf16>
    %3 = vector.shape_cast %2 : vector<1x32x128xbf16> to vector<32x128xbf16>
    %c0_4 = arith.constant 0 : index
    %c0_5 = arith.constant 0 : index
    %c0_6 = arith.constant 0 : index
    %4 = vector.load %arg2[%c0_4, %c0_5, %c0_6] : memref<2x32x128xbf16, #tpu.memory_space<vmem>>, vector<1x32x128xbf16>
    %5 = vector.shape_cast %4 : vector<1x32x128xbf16> to vector<32x128xbf16>
    %c1_7 = arith.constant 1 : index
    %c0_8 = arith.constant 0 : index
    %c0_9 = arith.constant 0 : index
    %6 = vector.load %arg2[%c1_7, %c0_8, %c0_9] : memref<2x32x128xbf16, #tpu.memory_space<vmem>>, vector<1x32x128xbf16>
    %7 = vector.shape_cast %6 : vector<1x32x128xbf16> to vector<32x128xbf16>
    %c0_10 = arith.constant 0 : index
    %c0_11 = arith.constant 0 : index
    %8 = vector.load %arg0[%c0_10, %c0_11] : memref<64x32xbf16, #tpu.memory_space<vmem>>, vector<64x32xbf16>
    %cst = arith.constant dense<0.000000e+00> : vector<64x128xf32>
    %9 = tpu.matmul %8, %1, %cst {dimension_numbers = #tpu.dot_dimension_numbers<[1], [0], [0], [1], [0, 0, 1, 1], [], []>} : vector<64x32xbf16>, vector<32x128xbf16>, vector<64x128xf32> -> vector<64x128xf32>
    %c0_12 = arith.constant 0 : index
    %c0_13 = arith.constant 0 : index
    %c0_14 = arith.constant 0 : index
    %10 = vector.load %arg3[%c0_12, %c0_13, %c0_14] : memref<2x1x128xf32, #tpu.memory_space<vmem>>, vector<1x1x128xf32>
    %11 = vector.shape_cast %10 : vector<1x1x128xf32> to vector<1x128xf32>
    %12 = vector.shape_cast %11 : vector<1x128xf32> to vector<1x128xf32>
    %13 = vector.broadcast %12 : vector<1x128xf32> to vector<64x128xf32>
    %14 = arith.addf %9, %13 : vector<64x128xf32>
    %c0_15 = arith.constant 0 : index
    %c0_16 = arith.constant 0 : index
    %15 = vector.load %arg11[%c0_15, %c0_16] : memref<64x128xf32, #tpu.memory_space<vmem>>, vector<64x128xf32>
    tpu.vector_store %arg11[%c0_15, %c0_16], %14 {strides = array<i32>} : memref<64x128xf32, #tpu.memory_space<vmem>>, vector<64x128xf32>,
    %c1_17 = arith.constant 1 : index
    %c0_18 = arith.constant 0 : index
    %c0_19 = arith.constant 0 : index
    %16 = vector.load %arg3[%c1_17, %c0_18, %c0_19] : memref<2x1x128xf32, #tpu.memory_space<vmem>>, vector<1x1x128xf32>
    %17 = vector.shape_cast %16 : vector<1x1x128xf32> to vector<1x128xf32>
    %18 = vector.shape_cast %17 : vector<1x128xf32> to vector<1x128xf32>
    %19 = vector.broadcast %18 : vector<1x128xf32> to vector<8x128xf32>
    %c0_20 = arith.constant 0 : index
    %c0_21 = arith.constant 0 : index
    %c0_22 = arith.constant 0 : index
    %20 = vector.load %arg5[%c0_20, %c0_21, %c0_22] : memref<2x8x32xf32, #tpu.memory_space<vmem>>, vector<1x8x32xf32>
    %21 = vector.shape_cast %20 : vector<1x8x32xf32> to vector<8x32xf32>
    %c1_23 = arith.constant 1 : index
    %c0_24 = arith.constant 0 : index
    %c0_25 = arith.constant 0 : index
    %22 = vector.load %arg5[%c1_23, %c0_24, %c0_25] : memref<2x8x32xf32, #tpu.memory_space<vmem>>, vector<1x8x32xf32>
    %23 = vector.shape_cast %22 : vector<1x8x32xf32> to vector<8x32xf32>
    %c0_26 = arith.constant 0 : index
    %c0_27 = arith.constant 0 : index
    %c0_28 = arith.constant 0 : index
    %24 = vector.load %arg6[%c0_26, %c0_27, %c0_28] : memref<2x8x32xf32, #tpu.memory_space<vmem>>, vector<1x8x32xf32>
    %25 = vector.shape_cast %24 : vector<1x8x32xf32> to vector<8x32xf32>
    %c1_29 = arith.constant 1 : index
    %c0_30 = arith.constant 0 : index
    %c0_31 = arith.constant 0 : index
    %26 = vector.load %arg6[%c1_29, %c0_30, %c0_31] : memref<2x8x32xf32, #tpu.memory_space<vmem>>, vector<1x8x32xf32>
    %27 = vector.shape_cast %26 : vector<1x8x32xf32> to vector<8x32xf32>
    %c0_i32 = arith.constant 0 : i32
    %c8_i32 = arith.constant 8 : i32
    %28 = arith.muli %c0_i32, %c8_i32 : i32
    %29 = arith.truncf %21 : vector<8x32xf32> to vector<8x32xbf16>
    %30 = arith.index_cast %28 : i32 to index
    %c0_32 = arith.constant 0 : index
    %31 = vector.load %arg11[%30, %c0_32] : memref<64x128xf32, #tpu.memory_space<vmem>>, vector<8x128xf32>
    %cst_33 = arith.constant dense<0.000000e+00> : vector<8x128xf32>
    %32 = tpu.matmul %29, %5, %cst_33 {dimension_numbers = #tpu.dot_dimension_numbers<[1], [0], [0], [1], [0, 0, 1, 1], [], []>} : vector<8x32xbf16>, vector<32x128xbf16>, vector<8x128xf32> -> vector<8x128xf32>
    %33 = arith.addf %31, %32 : vector<8x128xf32>
    %34 = arith.negf %33 : vector<8x128xf32>
    %35 = math.exp %34 : vector<8x128xf32>
    %cst_34 = arith.constant 1.000000e+00 : f32
    %36 = vector.broadcast %cst_34 : f32 to vector<8x128xf32>
    %37 = arith.addf %36, %35 : vector<8x128xf32>
    %38 = arith.divf %36, %37 : vector<8x128xf32>
    %39 = math.tanh %33 : vector<8x128xf32>
    %40 = vector.extract_strided_slice %38 {offsets = [0, 0], sizes = [8, 32], strides = [1, 1]} : vector<8x128xf32> to vector<8x32xf32>
    %41 = vector.extract_strided_slice %38 {offsets = [0, 32], sizes = [8, 32], strides = [1, 1]} : vector<8x128xf32> to vector<8x32xf32>
    %42 = vector.extract_strided_slice %38 {offsets = [0, 96], sizes = [8, 32], strides = [1, 1]} : vector<8x128xf32> to vector<8x32xf32>
    %43 = vector.extract_strided_slice %39 {offsets = [0, 64], sizes = [8, 32], strides = [1, 1]} : vector<8x128xf32> to vector<8x32xf32>
    %44 = arith.mulf %41, %25 : vector<8x32xf32>
    %45 = arith.mulf %40, %43 : vector<8x32xf32>
    %46 = arith.addf %44, %45 : vector<8x32xf32>
    %47 = math.tanh %46 : vector<8x32xf32>
    %48 = arith.mulf %42, %47 : vector<8x32xf32>
    %49 = arith.truncf %23 : vector<8x32xf32> to vector<8x32xbf16>
    %50 = arith.truncf %48 : vector<8x32xf32> to vector<8x32xbf16>
    %cst_35 = arith.constant dense<0.000000e+00> : vector<8x128xf32>
    %51 = tpu.matmul %50, %3, %cst_35 {dimension_numbers = #tpu.dot_dimension_numbers<[1], [0], [0], [1], [0, 0, 1, 1], [], []>} : vector<8x32xbf16>, vector<32x128xbf16>, vector<8x128xf32> -> vector<8x128xf32>
    %cst_36 = arith.constant dense<0.000000e+00> : vector<8x128xf32>
    %52 = tpu.matmul %49, %7, %cst_36 {dimension_numbers = #tpu.dot_dimension_numbers<[1], [0], [0], [1], [0, 0, 1, 1], [], []>} : vector<8x32xbf16>, vector<32x128xbf16>, vector<8x128xf32> -> vector<8x128xf32>
    %53 = arith.addf %51, %52 : vector<8x128xf32>
    %54 = arith.addf %53, %19 : vector<8x128xf32>
    %55 = arith.negf %54 : vector<8x128xf32>
    %56 = math.exp %55 : vector<8x128xf32>
    %cst_37 = arith.constant 1.000000e+00 : f32
    %57 = vector.broadcast %cst_37 : f32 to vector<8x128xf32>
    %58 = arith.addf %57, %56 : vector<8x128xf32>
    %59 = arith.divf %57, %58 : vector<8x128xf32>
    %60 = math.tanh %54 : vector<8x128xf32>
    %61 = vector.extract_strided_slice %59 {offsets = [0, 0], sizes = [8, 32], strides = [1, 1]} : vector<8x128xf32> to vector<8x32xf32>
    %62 = vector.extract_strided_slice %59 {offsets = [0, 32], sizes = [8, 32], strides = [1, 1]} : vector<8x128xf32> to vector<8x32xf32>
    %63 = vector.extract_strided_slice %59 {offsets = [0, 96], sizes = [8, 32], strides = [1, 1]} : vector<8x128xf32> to vector<8x32xf32>
    %64 = vector.extract_strided_slice %60 {offsets = [0, 64], sizes = [8, 32], strides = [1, 1]} : vector<8x128xf32> to vector<8x32xf32>
    %65 = arith.mulf %62, %27 : vector<8x32xf32>
    %66 = arith.mulf %61, %64 : vector<8x32xf32>
    %67 = arith.addf %65, %66 : vector<8x32xf32>
    %68 = math.tanh %67 : vector<8x32xf32>
    %69 = arith.mulf %63, %68 : vector<8x32xf32>
    %70 = arith.index_cast %28 : i32 to index
    %c0_38 = arith.constant 0 : index
    %71 = vector.load %arg12[%70, %c0_38] : memref<64x32xf32, #tpu.memory_space<vmem>>, vector<8x32xf32>
    tpu.vector_store %arg12[%70, %c0_38], %69 {strides = array<i32>} : memref<64x32xf32, #tpu.memory_space<vmem>>, vector<8x32xf32>,
    %c1_i32 = arith.constant 1 : i32
    %c8_i32_39 = arith.constant 8 : i32
    %72 = arith.muli %c1_i32, %c8_i32_39 : i32
    %73 = arith.truncf %48 : vector<8x32xf32> to vector<8x32xbf16>
    %74 = arith.index_cast %72 : i32 to index
    %c0_40 = arith.constant 0 : index
    %75 = vector.load %arg11[%74, %c0_40] : memref<64x128xf32, #tpu.memory_space<vmem>>, vector<8x128xf32>
    %cst_41 = arith.constant dense<0.000000e+00> : vector<8x128xf32>
    %76 = tpu.matmul %73, %5, %cst_41 {dimension_numbers = #tpu.dot_dimension_numbers<[1], [0], [0], [1], [0, 0, 1, 1], [], []>} : vector<8x32xbf16>, vector<32x128xbf16>, vector<8x128xf32> -> vector<8x128xf32>
    %77 = arith.addf %75, %76 : vector<8x128xf32>
    %78 = arith.negf %77 : vector<8x128xf32>
    %79 = math.exp %78 : vector<8x128xf32>
    %cst_42 = arith.constant 1.000000e+00 : f32
    %80 = vector.broadcast %cst_42 : f32 to vector<8x128xf32>
    %81 = arith.addf %80, %79 : vector<8x128xf32>
    %82 = arith.divf %80, %81 : vector<8x128xf32>
    %83 = math.tanh %77 : vector<8x128xf32>
    %84 = vector.extract_strided_slice %82 {offsets = [0, 0], sizes = [8, 32], strides = [1, 1]} : vector<8x128xf32> to vector<8x32xf32>
    %85 = vector.extract_strided_slice %82 {offsets = [0, 32], sizes = [8, 32], strides = [1, 1]} : vector<8x128xf32> to vector<8x32xf32>
    %86 = vector.extract_strided_slice %82 {offsets = [0, 96], sizes = [8, 32], strides = [1, 1]} : vector<8x128xf32> to vector<8x32xf32>
    %87 = vector.extract_strided_slice %83 {offsets = [0, 64], sizes = [8, 32], strides = [1, 1]} : vector<8x128xf32> to vector<8x32xf32>
    %88 = arith.mulf %85, %46 : vector<8x32xf32>
    %89 = arith.mulf %84, %87 : vector<8x32xf32>
    %90 = arith.addf %88, %89 : vector<8x32xf32>
    %91 = math.tanh %90 : vector<8x32xf32>
    %92 = arith.mulf %86, %91 : vector<8x32xf32>
    %93 = arith.truncf %69 : vector<8x32xf32> to vector<8x32xbf16>
    %94 = arith.truncf %92 : vector<8x32xf32> to vector<8x32xbf16>
    %cst_43 = arith.constant dense<0.000000e+00> : vector<8x128xf32>
    %95 = tpu.matmul %94, %3, %cst_43 {dimension_numbers = #tpu.dot_dimension_numbers<[1], [0], [0], [1], [0, 0, 1, 1], [], []>} : vector<8x32xbf16>, vector<32x128xbf16>, vector<8x128xf32> -> vector<8x128xf32>
    %cst_44 = arith.constant dense<0.000000e+00> : vector<8x128xf32>
    %96 = tpu.matmul %93, %7, %cst_44 {dimension_numbers = #tpu.dot_dimension_numbers<[1], [0], [0], [1], [0, 0, 1, 1], [], []>} : vector<8x32xbf16>, vector<32x128xbf16>, vector<8x128xf32> -> vector<8x128xf32>
    %97 = arith.addf %95, %96 : vector<8x128xf32>
    %98 = arith.addf %97, %19 : vector<8x128xf32>
    %99 = arith.negf %98 : vector<8x128xf32>
    %100 = math.exp %99 : vector<8x128xf32>
    %cst_45 = arith.constant 1.000000e+00 : f32
    %101 = vector.broadcast %cst_45 : f32 to vector<8x128xf32>
    %102 = arith.addf %101, %100 : vector<8x128xf32>
    %103 = arith.divf %101, %102 : vector<8x128xf32>
    %104 = math.tanh %98 : vector<8x128xf32>
    %105 = vector.extract_strided_slice %103 {offsets = [0, 0], sizes = [8, 32], strides = [1, 1]} : vector<8x128xf32> to vector<8x32xf32>
    %106 = vector.extract_strided_slice %103 {offsets = [0, 32], sizes = [8, 32], strides = [1, 1]} : vector<8x128xf32> to vector<8x32xf32>
    %107 = vector.extract_strided_slice %103 {offsets = [0, 96], sizes = [8, 32], strides = [1, 1]} : vector<8x128xf32> to vector<8x32xf32>
    %108 = vector.extract_strided_slice %104 {offsets = [0, 64], sizes = [8, 32], strides = [1, 1]} : vector<8x128xf32> to vector<8x32xf32>
    %109 = arith.mulf %106, %67 : vector<8x32xf32>
    %110 = arith.mulf %105, %108 : vector<8x32xf32>
    %111 = arith.addf %109, %110 : vector<8x32xf32>
    %112 = math.tanh %111 : vector<8x32xf32>
    %113 = arith.mulf %107, %112 : vector<8x32xf32>
    %114 = arith.index_cast %72 : i32 to index
    %c0_46 = arith.constant 0 : index
    %115 = vector.load %arg12[%114, %c0_46] : memref<64x32xf32, #tpu.memory_space<vmem>>, vector<8x32xf32>
    tpu.vector_store %arg12[%114, %c0_46], %113 {strides = array<i32>} : memref<64x32xf32, #tpu.memory_space<vmem>>, vector<8x32xf32>,
    %c2_i32 = arith.constant 2 : i32
    %c8_i32_47 = arith.constant 8 : i32
    %116 = arith.muli %c2_i32, %c8_i32_47 : i32
    %117 = arith.truncf %92 : vector<8x32xf32> to vector<8x32xbf16>
    %118 = arith.index_cast %116 : i32 to index
    %c0_48 = arith.constant 0 : index
    %119 = vector.load %arg11[%118, %c0_48] : memref<64x128xf32, #tpu.memory_space<vmem>>, vector<8x128xf32>
    %cst_49 = arith.constant dense<0.000000e+00> : vector<8x128xf32>
    %120 = tpu.matmul %117, %5, %cst_49 {dimension_numbers = #tpu.dot_dimension_numbers<[1], [0], [0], [1], [0, 0, 1, 1], [], []>} : vector<8x32xbf16>, vector<32x128xbf16>, vector<8x128xf32> -> vector<8x128xf32>
    %121 = arith.addf %119, %120 : vector<8x128xf32>
    %122 = arith.negf %121 : vector<8x128xf32>
    %123 = math.exp %122 : vector<8x128xf32>
    %cst_50 = arith.constant 1.000000e+00 : f32
    %124 = vector.broadcast %cst_50 : f32 to vector<8x128xf32>
    %125 = arith.addf %124, %123 : vector<8x128xf32>
    %126 = arith.divf %124, %125 : vector<8x128xf32>
    %127 = math.tanh %121 : vector<8x128xf32>
    %128 = vector.extract_strided_slice %126 {offsets = [0, 0], sizes = [8, 32], strides = [1, 1]} : vector<8x128xf32> to vector<8x32xf32>
    %129 = vector.extract_strided_slice %126 {offsets = [0, 32], sizes = [8, 32], strides = [1, 1]} : vector<8x128xf32> to vector<8x32xf32>
    %130 = vector.extract_strided_slice %126 {offsets = [0, 96], sizes = [8, 32], strides = [1, 1]} : vector<8x128xf32> to vector<8x32xf32>
    %131 = vector.extract_strided_slice %127 {offsets = [0, 64], sizes = [8, 32], strides = [1, 1]} : vector<8x128xf32> to vector<8x32xf32>
    %132 = arith.mulf %129, %90 : vector<8x32xf32>
    %133 = arith.mulf %128, %131 : vector<8x32xf32>
    %134 = arith.addf %132, %133 : vector<8x32xf32>
    %135 = math.tanh %134 : vector<8x32xf32>
    %136 = arith.mulf %130, %135 : vector<8x32xf32>
    %137 = arith.truncf %113 : vector<8x32xf32> to vector<8x32xbf16>
    %138 = arith.truncf %136 : vector<8x32xf32> to vector<8x32xbf16>
    %cst_51 = arith.constant dense<0.000000e+00> : vector<8x128xf32>
    %139 = tpu.matmul %138, %3, %cst_51 {dimension_numbers = #tpu.dot_dimension_numbers<[1], [0], [0], [1], [0, 0, 1, 1], [], []>} : vector<8x32xbf16>, vector<32x128xbf16>, vector<8x128xf32> -> vector<8x128xf32>
    %cst_52 = arith.constant dense<0.000000e+00> : vector<8x128xf32>
    %140 = tpu.matmul %137, %7, %cst_52 {dimension_numbers = #tpu.dot_dimension_numbers<[1], [0], [0], [1], [0, 0, 1, 1], [], []>} : vector<8x32xbf16>, vector<32x128xbf16>, vector<8x128xf32> -> vector<8x128xf32>
    %141 = arith.addf %139, %140 : vector<8x128xf32>
    %142 = arith.addf %141, %19 : vector<8x128xf32>
    %143 = arith.negf %142 : vector<8x128xf32>
    %144 = math.exp %143 : vector<8x128xf32>
    %cst_53 = arith.constant 1.000000e+00 : f32
    %145 = vector.broadcast %cst_53 : f32 to vector<8x128xf32>
    %146 = arith.addf %145, %144 : vector<8x128xf32>
    %147 = arith.divf %145, %146 : vector<8x128xf32>
    %148 = math.tanh %142 : vector<8x128xf32>
    %149 = vector.extract_strided_slice %147 {offsets = [0, 0], sizes = [8, 32], strides = [1, 1]} : vector<8x128xf32> to vector<8x32xf32>
    %150 = vector.extract_strided_slice %147 {offsets = [0, 32], sizes = [8, 32], strides = [1, 1]} : vector<8x128xf32> to vector<8x32xf32>
    %151 = vector.extract_strided_slice %147 {offsets = [0, 96], sizes = [8, 32], strides = [1, 1]} : vector<8x128xf32> to vector<8x32xf32>
    %152 = vector.extract_strided_slice %148 {offsets = [0, 64], sizes = [8, 32], strides = [1, 1]} : vector<8x128xf32> to vector<8x32xf32>
    %153 = arith.mulf %150, %111 : vector<8x32xf32>
    %154 = arith.mulf %149, %152 : vector<8x32xf32>
    %155 = arith.addf %153, %154 : vector<8x32xf32>
    %156 = math.tanh %155 : vector<8x32xf32>
    %157 = arith.mulf %151, %156 : vector<8x32xf32>
    %158 = arith.index_cast %116 : i32 to index
    %c0_54 = arith.constant 0 : index
    %159 = vector.load %arg12[%158, %c0_54] : memref<64x32xf32, #tpu.memory_space<vmem>>, vector<8x32xf32>
    tpu.vector_store %arg12[%158, %c0_54], %157 {strides = array<i32>} : memref<64x32xf32, #tpu.memory_space<vmem>>, vector<8x32xf32>,
    %c3_i32 = arith.constant 3 : i32
    %c8_i32_55 = arith.constant 8 : i32
    %160 = arith.muli %c3_i32, %c8_i32_55 : i32
    %161 = arith.truncf %136 : vector<8x32xf32> to vector<8x32xbf16>
    %162 = arith.index_cast %160 : i32 to index
    %c0_56 = arith.constant 0 : index
    %163 = vector.load %arg11[%162, %c0_56] : memref<64x128xf32, #tpu.memory_space<vmem>>, vector<8x128xf32>
    %cst_57 = arith.constant dense<0.000000e+00> : vector<8x128xf32>
    %164 = tpu.matmul %161, %5, %cst_57 {dimension_numbers = #tpu.dot_dimension_numbers<[1], [0], [0], [1], [0, 0, 1, 1], [], []>} : vector<8x32xbf16>, vector<32x128xbf16>, vector<8x128xf32> -> vector<8x128xf32>
    %165 = arith.addf %163, %164 : vector<8x128xf32>
    %166 = arith.negf %165 : vector<8x128xf32>
    %167 = math.exp %166 : vector<8x128xf32>
    %cst_58 = arith.constant 1.000000e+00 : f32
    %168 = vector.broadcast %cst_58 : f32 to vector<8x128xf32>
    %169 = arith.addf %168, %167 : vector<8x128xf32>
    %170 = arith.divf %168, %169 : vector<8x128xf32>
    %171 = math.tanh %165 : vector<8x128xf32>
    %172 = vector.extract_strided_slice %170 {offsets = [0, 0], sizes = [8, 32], strides = [1, 1]} : vector<8x128xf32> to vector<8x32xf32>
    %173 = vector.extract_strided_slice %170 {offsets = [0, 32], sizes = [8, 32], strides = [1, 1]} : vector<8x128xf32> to vector<8x32xf32>
    %174 = vector.extract_strided_slice %170 {offsets = [0, 96], sizes = [8, 32], strides = [1, 1]} : vector<8x128xf32> to vector<8x32xf32>
    %175 = vector.extract_strided_slice %171 {offsets = [0, 64], sizes = [8, 32], strides = [1, 1]} : vector<8x128xf32> to vector<8x32xf32>
    %176 = arith.mulf %173, %134 : vector<8x32xf32>
    %177 = arith.mulf %172, %175 : vector<8x32xf32>
    %178 = arith.addf %176, %177 : vector<8x32xf32>
    %179 = math.tanh %178 : vector<8x32xf32>
    %180 = arith.mulf %174, %179 : vector<8x32xf32>
    %181 = arith.truncf %157 : vector<8x32xf32> to vector<8x32xbf16>
    %182 = arith.truncf %180 : vector<8x32xf32> to vector<8x32xbf16>
    %cst_59 = arith.constant dense<0.000000e+00> : vector<8x128xf32>
    %183 = tpu.matmul %182, %3, %cst_59 {dimension_numbers = #tpu.dot_dimension_numbers<[1], [0], [0], [1], [0, 0, 1, 1], [], []>} : vector<8x32xbf16>, vector<32x128xbf16>, vector<8x128xf32> -> vector<8x128xf32>
    %cst_60 = arith.constant dense<0.000000e+00> : vector<8x128xf32>
    %184 = tpu.matmul %181, %7, %cst_60 {dimension_numbers = #tpu.dot_dimension_numbers<[1], [0], [0], [1], [0, 0, 1, 1], [], []>} : vector<8x32xbf16>, vector<32x128xbf16>, vector<8x128xf32> -> vector<8x128xf32>
    %185 = arith.addf %183, %184 : vector<8x128xf32>
    %186 = arith.addf %185, %19 : vector<8x128xf32>
    %187 = arith.negf %186 : vector<8x128xf32>
    %188 = math.exp %187 : vector<8x128xf32>
    %cst_61 = arith.constant 1.000000e+00 : f32
    %189 = vector.broadcast %cst_61 : f32 to vector<8x128xf32>
    %190 = arith.addf %189, %188 : vector<8x128xf32>
    %191 = arith.divf %189, %190 : vector<8x128xf32>
    %192 = math.tanh %186 : vector<8x128xf32>
    %193 = vector.extract_strided_slice %191 {offsets = [0, 0], sizes = [8, 32], strides = [1, 1]} : vector<8x128xf32> to vector<8x32xf32>
    %194 = vector.extract_strided_slice %191 {offsets = [0, 32], sizes = [8, 32], strides = [1, 1]} : vector<8x128xf32> to vector<8x32xf32>
    %195 = vector.extract_strided_slice %191 {offsets = [0, 96], sizes = [8, 32], strides = [1, 1]} : vector<8x128xf32> to vector<8x32xf32>
    %196 = vector.extract_strided_slice %192 {offsets = [0, 64], sizes = [8, 32], strides = [1, 1]} : vector<8x128xf32> to vector<8x32xf32>
    %197 = arith.mulf %194, %155 : vector<8x32xf32>
    %198 = arith.mulf %193, %196 : vector<8x32xf32>
    %199 = arith.addf %197, %198 : vector<8x32xf32>
    %200 = math.tanh %199 : vector<8x32xf32>
    %201 = arith.mulf %195, %200 : vector<8x32xf32>
    %202 = arith.index_cast %160 : i32 to index
    %c0_62 = arith.constant 0 : index
    %203 = vector.load %arg12[%202, %c0_62] : memref<64x32xf32, #tpu.memory_space<vmem>>, vector<8x32xf32>
    tpu.vector_store %arg12[%202, %c0_62], %201 {strides = array<i32>} : memref<64x32xf32, #tpu.memory_space<vmem>>, vector<8x32xf32>,
    %c4_i32 = arith.constant 4 : i32
    %c8_i32_63 = arith.constant 8 : i32
    %204 = arith.muli %c4_i32, %c8_i32_63 : i32
    %205 = arith.truncf %180 : vector<8x32xf32> to vector<8x32xbf16>
    %206 = arith.index_cast %204 : i32 to index
    %c0_64 = arith.constant 0 : index
    %207 = vector.load %arg11[%206, %c0_64] : memref<64x128xf32, #tpu.memory_space<vmem>>, vector<8x128xf32>
    %cst_65 = arith.constant dense<0.000000e+00> : vector<8x128xf32>
    %208 = tpu.matmul %205, %5, %cst_65 {dimension_numbers = #tpu.dot_dimension_numbers<[1], [0], [0], [1], [0, 0, 1, 1], [], []>} : vector<8x32xbf16>, vector<32x128xbf16>, vector<8x128xf32> -> vector<8x128xf32>
    %209 = arith.addf %207, %208 : vector<8x128xf32>
    %210 = arith.negf %209 : vector<8x128xf32>
    %211 = math.exp %210 : vector<8x128xf32>
    %cst_66 = arith.constant 1.000000e+00 : f32
    %212 = vector.broadcast %cst_66 : f32 to vector<8x128xf32>
    %213 = arith.addf %212, %211 : vector<8x128xf32>
    %214 = arith.divf %212, %213 : vector<8x128xf32>
    %215 = math.tanh %209 : vector<8x128xf32>
    %216 = vector.extract_strided_slice %214 {offsets = [0, 0], sizes = [8, 32], strides = [1, 1]} : vector<8x128xf32> to vector<8x32xf32>
    %217 = vector.extract_strided_slice %214 {offsets = [0, 32], sizes = [8, 32], strides = [1, 1]} : vector<8x128xf32> to vector<8x32xf32>
    %218 = vector.extract_strided_slice %214 {offsets = [0, 96], sizes = [8, 32], strides = [1, 1]} : vector<8x128xf32> to vector<8x32xf32>
    %219 = vector.extract_strided_slice %215 {offsets = [0, 64], sizes = [8, 32], strides = [1, 1]} : vector<8x128xf32> to vector<8x32xf32>
    %220 = arith.mulf %217, %178 : vector<8x32xf32>
    %221 = arith.mulf %216, %219 : vector<8x32xf32>
    %222 = arith.addf %220, %221 : vector<8x32xf32>
    %223 = math.tanh %222 : vector<8x32xf32>
    %224 = arith.mulf %218, %223 : vector<8x32xf32>
    %225 = arith.truncf %201 : vector<8x32xf32> to vector<8x32xbf16>
    %226 = arith.truncf %224 : vector<8x32xf32> to vector<8x32xbf16>
    %cst_67 = arith.constant dense<0.000000e+00> : vector<8x128xf32>
    %227 = tpu.matmul %226, %3, %cst_67 {dimension_numbers = #tpu.dot_dimension_numbers<[1], [0], [0], [1], [0, 0, 1, 1], [], []>} : vector<8x32xbf16>, vector<32x128xbf16>, vector<8x128xf32> -> vector<8x128xf32>
    %cst_68 = arith.constant dense<0.000000e+00> : vector<8x128xf32>
    %228 = tpu.matmul %225, %7, %cst_68 {dimension_numbers = #tpu.dot_dimension_numbers<[1], [0], [0], [1], [0, 0, 1, 1], [], []>} : vector<8x32xbf16>, vector<32x128xbf16>, vector<8x128xf32> -> vector<8x128xf32>
    %229 = arith.addf %227, %228 : vector<8x128xf32>
    %230 = arith.addf %229, %19 : vector<8x128xf32>
    %231 = arith.negf %230 : vector<8x128xf32>
    %232 = math.exp %231 : vector<8x128xf32>
    %cst_69 = arith.constant 1.000000e+00 : f32
    %233 = vector.broadcast %cst_69 : f32 to vector<8x128xf32>
    %234 = arith.addf %233, %232 : vector<8x128xf32>
    %235 = arith.divf %233, %234 : vector<8x128xf32>
    %236 = math.tanh %230 : vector<8x128xf32>
    %237 = vector.extract_strided_slice %235 {offsets = [0, 0], sizes = [8, 32], strides = [1, 1]} : vector<8x128xf32> to vector<8x32xf32>
    %238 = vector.extract_strided_slice %235 {offsets = [0, 32], sizes = [8, 32], strides = [1, 1]} : vector<8x128xf32> to vector<8x32xf32>
    %239 = vector.extract_strided_slice %235 {offsets = [0, 96], sizes = [8, 32], strides = [1, 1]} : vector<8x128xf32> to vector<8x32xf32>
    %240 = vector.extract_strided_slice %236 {offsets = [0, 64], sizes = [8, 32], strides = [1, 1]} : vector<8x128xf32> to vector<8x32xf32>
    %241 = arith.mulf %238, %199 : vector<8x32xf32>
    %242 = arith.mulf %237, %240 : vector<8x32xf32>
    %243 = arith.addf %241, %242 : vector<8x32xf32>
    %244 = math.tanh %243 : vector<8x32xf32>
    %245 = arith.mulf %239, %244 : vector<8x32xf32>
    %246 = arith.index_cast %204 : i32 to index
    %c0_70 = arith.constant 0 : index
    %247 = vector.load %arg12[%246, %c0_70] : memref<64x32xf32, #tpu.memory_space<vmem>>, vector<8x32xf32>
    tpu.vector_store %arg12[%246, %c0_70], %245 {strides = array<i32>} : memref<64x32xf32, #tpu.memory_space<vmem>>, vector<8x32xf32>,
    %c5_i32 = arith.constant 5 : i32
    %c8_i32_71 = arith.constant 8 : i32
    %248 = arith.muli %c5_i32, %c8_i32_71 : i32
    %249 = arith.truncf %224 : vector<8x32xf32> to vector<8x32xbf16>
    %250 = arith.index_cast %248 : i32 to index
    %c0_72 = arith.constant 0 : index
    %251 = vector.load %arg11[%250, %c0_72] : memref<64x128xf32, #tpu.memory_space<vmem>>, vector<8x128xf32>
    %cst_73 = arith.constant dense<0.000000e+00> : vector<8x128xf32>
    %252 = tpu.matmul %249, %5, %cst_73 {dimension_numbers = #tpu.dot_dimension_numbers<[1], [0], [0], [1], [0, 0, 1, 1], [], []>} : vector<8x32xbf16>, vector<32x128xbf16>, vector<8x128xf32> -> vector<8x128xf32>
    %253 = arith.addf %251, %252 : vector<8x128xf32>
    %254 = arith.negf %253 : vector<8x128xf32>
    %255 = math.exp %254 : vector<8x128xf32>
    %cst_74 = arith.constant 1.000000e+00 : f32
    %256 = vector.broadcast %cst_74 : f32 to vector<8x128xf32>
    %257 = arith.addf %256, %255 : vector<8x128xf32>
    %258 = arith.divf %256, %257 : vector<8x128xf32>
    %259 = math.tanh %253 : vector<8x128xf32>
    %260 = vector.extract_strided_slice %258 {offsets = [0, 0], sizes = [8, 32], strides = [1, 1]} : vector<8x128xf32> to vector<8x32xf32>
    %261 = vector.extract_strided_slice %258 {offsets = [0, 32], sizes = [8, 32], strides = [1, 1]} : vector<8x128xf32> to vector<8x32xf32>
    %262 = vector.extract_strided_slice %258 {offsets = [0, 96], sizes = [8, 32], strides = [1, 1]} : vector<8x128xf32> to vector<8x32xf32>
    %263 = vector.extract_strided_slice %259 {offsets = [0, 64], sizes = [8, 32], strides = [1, 1]} : vector<8x128xf32> to vector<8x32xf32>
    %264 = arith.mulf %261, %222 : vector<8x32xf32>
    %265 = arith.mulf %260, %263 : vector<8x32xf32>
    %266 = arith.addf %264, %265 : vector<8x32xf32>
    %267 = math.tanh %266 : vector<8x32xf32>
    %268 = arith.mulf %262, %267 : vector<8x32xf32>
    %269 = arith.truncf %245 : vector<8x32xf32> to vector<8x32xbf16>
    %270 = arith.truncf %268 : vector<8x32xf32> to vector<8x32xbf16>
    %cst_75 = arith.constant dense<0.000000e+00> : vector<8x128xf32>
    %271 = tpu.matmul %270, %3, %cst_75 {dimension_numbers = #tpu.dot_dimension_numbers<[1], [0], [0], [1], [0, 0, 1, 1], [], []>} : vector<8x32xbf16>, vector<32x128xbf16>, vector<8x128xf32> -> vector<8x128xf32>
    %cst_76 = arith.constant dense<0.000000e+00> : vector<8x128xf32>
    %272 = tpu.matmul %269, %7, %cst_76 {dimension_numbers = #tpu.dot_dimension_numbers<[1], [0], [0], [1], [0, 0, 1, 1], [], []>} : vector<8x32xbf16>, vector<32x128xbf16>, vector<8x128xf32> -> vector<8x128xf32>
    %273 = arith.addf %271, %272 : vector<8x128xf32>
    %274 = arith.addf %273, %19 : vector<8x128xf32>
    %275 = arith.negf %274 : vector<8x128xf32>
    %276 = math.exp %275 : vector<8x128xf32>
    %cst_77 = arith.constant 1.000000e+00 : f32
    %277 = vector.broadcast %cst_77 : f32 to vector<8x128xf32>
    %278 = arith.addf %277, %276 : vector<8x128xf32>
    %279 = arith.divf %277, %278 : vector<8x128xf32>
    %280 = math.tanh %274 : vector<8x128xf32>
    %281 = vector.extract_strided_slice %279 {offsets = [0, 0], sizes = [8, 32], strides = [1, 1]} : vector<8x128xf32> to vector<8x32xf32>
    %282 = vector.extract_strided_slice %279 {offsets = [0, 32], sizes = [8, 32], strides = [1, 1]} : vector<8x128xf32> to vector<8x32xf32>
    %283 = vector.extract_strided_slice %279 {offsets = [0, 96], sizes = [8, 32], strides = [1, 1]} : vector<8x128xf32> to vector<8x32xf32>
    %284 = vector.extract_strided_slice %280 {offsets = [0, 64], sizes = [8, 32], strides = [1, 1]} : vector<8x128xf32> to vector<8x32xf32>
    %285 = arith.mulf %282, %243 : vector<8x32xf32>
    %286 = arith.mulf %281, %284 : vector<8x32xf32>
    %287 = arith.addf %285, %286 : vector<8x32xf32>
    %288 = math.tanh %287 : vector<8x32xf32>
    %289 = arith.mulf %283, %288 : vector<8x32xf32>
    %290 = arith.index_cast %248 : i32 to index
    %c0_78 = arith.constant 0 : index
    %291 = vector.load %arg12[%290, %c0_78] : memref<64x32xf32, #tpu.memory_space<vmem>>, vector<8x32xf32>
    tpu.vector_store %arg12[%290, %c0_78], %289 {strides = array<i32>} : memref<64x32xf32, #tpu.memory_space<vmem>>, vector<8x32xf32>,
    %c6_i32 = arith.constant 6 : i32
    %c8_i32_79 = arith.constant 8 : i32
    %292 = arith.muli %c6_i32, %c8_i32_79 : i32
    %293 = arith.truncf %268 : vector<8x32xf32> to vector<8x32xbf16>
    %294 = arith.index_cast %292 : i32 to index
    %c0_80 = arith.constant 0 : index
    %295 = vector.load %arg11[%294, %c0_80] : memref<64x128xf32, #tpu.memory_space<vmem>>, vector<8x128xf32>
    %cst_81 = arith.constant dense<0.000000e+00> : vector<8x128xf32>
    %296 = tpu.matmul %293, %5, %cst_81 {dimension_numbers = #tpu.dot_dimension_numbers<[1], [0], [0], [1], [0, 0, 1, 1], [], []>} : vector<8x32xbf16>, vector<32x128xbf16>, vector<8x128xf32> -> vector<8x128xf32>
    %297 = arith.addf %295, %296 : vector<8x128xf32>
    %298 = arith.negf %297 : vector<8x128xf32>
    %299 = math.exp %298 : vector<8x128xf32>
    %cst_82 = arith.constant 1.000000e+00 : f32
    %300 = vector.broadcast %cst_82 : f32 to vector<8x128xf32>
    %301 = arith.addf %300, %299 : vector<8x128xf32>
    %302 = arith.divf %300, %301 : vector<8x128xf32>
    %303 = math.tanh %297 : vector<8x128xf32>
    %304 = vector.extract_strided_slice %302 {offsets = [0, 0], sizes = [8, 32], strides = [1, 1]} : vector<8x128xf32> to vector<8x32xf32>
    %305 = vector.extract_strided_slice %302 {offsets = [0, 32], sizes = [8, 32], strides = [1, 1]} : vector<8x128xf32> to vector<8x32xf32>
    %306 = vector.extract_strided_slice %302 {offsets = [0, 96], sizes = [8, 32], strides = [1, 1]} : vector<8x128xf32> to vector<8x32xf32>
    %307 = vector.extract_strided_slice %303 {offsets = [0, 64], sizes = [8, 32], strides = [1, 1]} : vector<8x128xf32> to vector<8x32xf32>
    %308 = arith.mulf %305, %266 : vector<8x32xf32>
    %309 = arith.mulf %304, %307 : vector<8x32xf32>
    %310 = arith.addf %308, %309 : vector<8x32xf32>
    %311 = math.tanh %310 : vector<8x32xf32>
    %312 = arith.mulf %306, %311 : vector<8x32xf32>
    %313 = arith.truncf %289 : vector<8x32xf32> to vector<8x32xbf16>
    %314 = arith.truncf %312 : vector<8x32xf32> to vector<8x32xbf16>
    %cst_83 = arith.constant dense<0.000000e+00> : vector<8x128xf32>
    %315 = tpu.matmul %314, %3, %cst_83 {dimension_numbers = #tpu.dot_dimension_numbers<[1], [0], [0], [1], [0, 0, 1, 1], [], []>} : vector<8x32xbf16>, vector<32x128xbf16>, vector<8x128xf32> -> vector<8x128xf32>
    %cst_84 = arith.constant dense<0.000000e+00> : vector<8x128xf32>
    %316 = tpu.matmul %313, %7, %cst_84 {dimension_numbers = #tpu.dot_dimension_numbers<[1], [0], [0], [1], [0, 0, 1, 1], [], []>} : vector<8x32xbf16>, vector<32x128xbf16>, vector<8x128xf32> -> vector<8x128xf32>
    %317 = arith.addf %315, %316 : vector<8x128xf32>
    %318 = arith.addf %317, %19 : vector<8x128xf32>
    %319 = arith.negf %318 : vector<8x128xf32>
    %320 = math.exp %319 : vector<8x128xf32>
    %cst_85 = arith.constant 1.000000e+00 : f32
    %321 = vector.broadcast %cst_85 : f32 to vector<8x128xf32>
    %322 = arith.addf %321, %320 : vector<8x128xf32>
    %323 = arith.divf %321, %322 : vector<8x128xf32>
    %324 = math.tanh %318 : vector<8x128xf32>
    %325 = vector.extract_strided_slice %323 {offsets = [0, 0], sizes = [8, 32], strides = [1, 1]} : vector<8x128xf32> to vector<8x32xf32>
    %326 = vector.extract_strided_slice %323 {offsets = [0, 32], sizes = [8, 32], strides = [1, 1]} : vector<8x128xf32> to vector<8x32xf32>
    %327 = vector.extract_strided_slice %323 {offsets = [0, 96], sizes = [8, 32], strides = [1, 1]} : vector<8x128xf32> to vector<8x32xf32>
    %328 = vector.extract_strided_slice %324 {offsets = [0, 64], sizes = [8, 32], strides = [1, 1]} : vector<8x128xf32> to vector<8x32xf32>
    %329 = arith.mulf %326, %287 : vector<8x32xf32>
    %330 = arith.mulf %325, %328 : vector<8x32xf32>
    %331 = arith.addf %329, %330 : vector<8x32xf32>
    %332 = math.tanh %331 : vector<8x32xf32>
    %333 = arith.mulf %327, %332 : vector<8x32xf32>
    %334 = arith.index_cast %292 : i32 to index
    %c0_86 = arith.constant 0 : index
    %335 = vector.load %arg12[%334, %c0_86] : memref<64x32xf32, #tpu.memory_space<vmem>>, vector<8x32xf32>
    tpu.vector_store %arg12[%334, %c0_86], %333 {strides = array<i32>} : memref<64x32xf32, #tpu.memory_space<vmem>>, vector<8x32xf32>,
    %c7_i32 = arith.constant 7 : i32
    %c8_i32_87 = arith.constant 8 : i32
    %336 = arith.muli %c7_i32, %c8_i32_87 : i32
    %337 = arith.truncf %312 : vector<8x32xf32> to vector<8x32xbf16>
    %338 = arith.index_cast %336 : i32 to index
    %c0_88 = arith.constant 0 : index
    %339 = vector.load %arg11[%338, %c0_88] : memref<64x128xf32, #tpu.memory_space<vmem>>, vector<8x128xf32>
    %cst_89 = arith.constant dense<0.000000e+00> : vector<8x128xf32>
    %340 = tpu.matmul %337, %5, %cst_89 {dimension_numbers = #tpu.dot_dimension_numbers<[1], [0], [0], [1], [0, 0, 1, 1], [], []>} : vector<8x32xbf16>, vector<32x128xbf16>, vector<8x128xf32> -> vector<8x128xf32>
    %341 = arith.addf %339, %340 : vector<8x128xf32>
    %342 = arith.negf %341 : vector<8x128xf32>
    %343 = math.exp %342 : vector<8x128xf32>
    %cst_90 = arith.constant 1.000000e+00 : f32
    %344 = vector.broadcast %cst_90 : f32 to vector<8x128xf32>
    %345 = arith.addf %344, %343 : vector<8x128xf32>
    %346 = arith.divf %344, %345 : vector<8x128xf32>
    %347 = math.tanh %341 : vector<8x128xf32>
    %348 = vector.extract_strided_slice %346 {offsets = [0, 0], sizes = [8, 32], strides = [1, 1]} : vector<8x128xf32> to vector<8x32xf32>
    %349 = vector.extract_strided_slice %346 {offsets = [0, 32], sizes = [8, 32], strides = [1, 1]} : vector<8x128xf32> to vector<8x32xf32>
    %350 = vector.extract_strided_slice %346 {offsets = [0, 96], sizes = [8, 32], strides = [1, 1]} : vector<8x128xf32> to vector<8x32xf32>
    %351 = vector.extract_strided_slice %347 {offsets = [0, 64], sizes = [8, 32], strides = [1, 1]} : vector<8x128xf32> to vector<8x32xf32>
    %352 = arith.mulf %349, %310 : vector<8x32xf32>
    %353 = arith.mulf %348, %351 : vector<8x32xf32>
    %354 = arith.addf %352, %353 : vector<8x32xf32>
    %355 = math.tanh %354 : vector<8x32xf32>
    %356 = arith.mulf %350, %355 : vector<8x32xf32>
    %357 = arith.truncf %333 : vector<8x32xf32> to vector<8x32xbf16>
    %358 = arith.truncf %356 : vector<8x32xf32> to vector<8x32xbf16>
    %cst_91 = arith.constant dense<0.000000e+00> : vector<8x128xf32>
    %359 = tpu.matmul %358, %3, %cst_91 {dimension_numbers = #tpu.dot_dimension_numbers<[1], [0], [0], [1], [0, 0, 1, 1], [], []>} : vector<8x32xbf16>, vector<32x128xbf16>, vector<8x128xf32> -> vector<8x128xf32>
    %cst_92 = arith.constant dense<0.000000e+00> : vector<8x128xf32>
    %360 = tpu.matmul %357, %7, %cst_92 {dimension_numbers = #tpu.dot_dimension_numbers<[1], [0], [0], [1], [0, 0, 1, 1], [], []>} : vector<8x32xbf16>, vector<32x128xbf16>, vector<8x128xf32> -> vector<8x128xf32>
    %361 = arith.addf %359, %360 : vector<8x128xf32>
    %362 = arith.addf %361, %19 : vector<8x128xf32>
    %363 = arith.negf %362 : vector<8x128xf32>
    %364 = math.exp %363 : vector<8x128xf32>
    %cst_93 = arith.constant 1.000000e+00 : f32
    %365 = vector.broadcast %cst_93 : f32 to vector<8x128xf32>
    %366 = arith.addf %365, %364 : vector<8x128xf32>
    %367 = arith.divf %365, %366 : vector<8x128xf32>
    %368 = math.tanh %362 : vector<8x128xf32>
    %369 = vector.extract_strided_slice %367 {offsets = [0, 0], sizes = [8, 32], strides = [1, 1]} : vector<8x128xf32> to vector<8x32xf32>
    %370 = vector.extract_strided_slice %367 {offsets = [0, 32], sizes = [8, 32], strides = [1, 1]} : vector<8x128xf32> to vector<8x32xf32>
    %371 = vector.extract_strided_slice %367 {offsets = [0, 96], sizes = [8, 32], strides = [1, 1]} : vector<8x128xf32> to vector<8x32xf32>
    %372 = vector.extract_strided_slice %368 {offsets = [0, 64], sizes = [8, 32], strides = [1, 1]} : vector<8x128xf32> to vector<8x32xf32>
    %373 = arith.mulf %370, %331 : vector<8x32xf32>
    %374 = arith.mulf %369, %372 : vector<8x32xf32>
    %375 = arith.addf %373, %374 : vector<8x32xf32>
    %376 = math.tanh %375 : vector<8x32xf32>
    %377 = arith.mulf %371, %376 : vector<8x32xf32>
    %378 = arith.index_cast %336 : i32 to index
    %c0_94 = arith.constant 0 : index
    %379 = vector.load %arg12[%378, %c0_94] : memref<64x32xf32, #tpu.memory_space<vmem>>, vector<8x32xf32>
    tpu.vector_store %arg12[%378, %c0_94], %377 {strides = array<i32>} : memref<64x32xf32, #tpu.memory_space<vmem>>, vector<8x32xf32>,
    %c8_i32_95 = arith.constant 8 : i32
    %c0_96 = arith.constant 0 : index
    %c0_97 = arith.constant 0 : index
    %c0_98 = arith.constant 0 : index
    %380 = vector.load %arg9[%c0_96, %c0_97, %c0_98] : memref<2x8x32xf32, #tpu.memory_space<vmem>>, vector<1x8x32xf32>
    %381 = vector.shape_cast %380 : vector<1x8x32xf32> to vector<8x32xf32>
    %382 = vector.shape_cast %356 : vector<8x32xf32> to vector<1x8x32xf32>
    tpu.vector_store %arg9[%c0_96, %c0_97, %c0_98], %382 {strides = array<i32>} : memref<2x8x32xf32, #tpu.memory_space<vmem>>, vector<1x8x32xf32>,
    %c0_99 = arith.constant 0 : index
    %c0_100 = arith.constant 0 : index
    %c0_101 = arith.constant 0 : index
    %383 = vector.load %arg10[%c0_99, %c0_100, %c0_101] : memref<2x8x32xf32, #tpu.memory_space<vmem>>, vector<1x8x32xf32>
    %384 = vector.shape_cast %383 : vector<1x8x32xf32> to vector<8x32xf32>
    %385 = vector.shape_cast %354 : vector<8x32xf32> to vector<1x8x32xf32>
    tpu.vector_store %arg10[%c0_99, %c0_100, %c0_101], %385 {strides = array<i32>} : memref<2x8x32xf32, #tpu.memory_space<vmem>>, vector<1x8x32xf32>,
    %c1_102 = arith.constant 1 : index
    %c0_103 = arith.constant 0 : index
    %c0_104 = arith.constant 0 : index
    %386 = vector.load %arg9[%c1_102, %c0_103, %c0_104] : memref<2x8x32xf32, #tpu.memory_space<vmem>>, vector<1x8x32xf32>
    %387 = vector.shape_cast %386 : vector<1x8x32xf32> to vector<8x32xf32>
    %388 = vector.shape_cast %377 : vector<8x32xf32> to vector<1x8x32xf32>
    tpu.vector_store %arg9[%c1_102, %c0_103, %c0_104], %388 {strides = array<i32>} : memref<2x8x32xf32, #tpu.memory_space<vmem>>, vector<1x8x32xf32>,
    %c1_105 = arith.constant 1 : index
    %c0_106 = arith.constant 0 : index
    %c0_107 = arith.constant 0 : index
    %389 = vector.load %arg10[%c1_105, %c0_106, %c0_107] : memref<2x8x32xf32, #tpu.memory_space<vmem>>, vector<1x8x32xf32>
    %390 = vector.shape_cast %389 : vector<1x8x32xf32> to vector<8x32xf32>
    %391 = vector.shape_cast %375 : vector<8x32xf32> to vector<1x8x32xf32>
    tpu.vector_store %arg10[%c1_105, %c0_106, %c0_107], %391 {strides = array<i32>} : memref<2x8x32xf32, #tpu.memory_space<vmem>>, vector<1x8x32xf32>,
    %c0_108 = arith.constant 0 : index
    %c0_109 = arith.constant 0 : index
    %392 = vector.load %arg12[%c0_108, %c0_109] : memref<64x32xf32, #tpu.memory_space<vmem>>, vector<64x32xf32>
    %393 = arith.truncf %392 : vector<64x32xf32> to vector<64x32xbf16>
    %c0_110 = arith.constant 0 : index
    %c0_111 = arith.constant 0 : index
    %394 = vector.load %arg4[%c0_110, %c0_111] : memref<64x32xbf16, #tpu.memory_space<vmem>>, vector<64x32xbf16>
    %cst_112 = arith.constant dense<0.000000e+00> : vector<64x64xf32>
    %395 = tpu.matmul %393, %394, %cst_112 {dimension_numbers = #tpu.dot_dimension_numbers<[1], [1], [0], [0], [0, 0, 1, 0], [], []>} : vector<64x32xbf16>, vector<64x32xbf16>, vector<64x64xf32> -> vector<64x64xf32>
    %c0_113 = arith.constant 0 : index
    %c0_114 = arith.constant 0 : index
    %396 = vector.load %arg7[%c0_113, %c0_114] : memref<64x64xf32, #tpu.memory_space<vmem>>, vector<64x64xf32>
    tpu.vector_store %arg7[%c0_113, %c0_114], %395 {strides = array<i32>} : memref<64x64xf32, #tpu.memory_space<vmem>>, vector<64x64xf32>,
    %397 = tpu.iota {dimensions = array<i32: 1>} : vector<64x64xi32>
    %c0_i32_115 = arith.constant 0 : i32
    %398 = vector.broadcast %c0_i32_115 : i32 to vector<64x64xi32>
    %399 = arith.cmpi eq, %397, %398 : vector<64x64xi32>
    %cst_116 = arith.constant -3.40282347E+38 : f32
    %400 = vector.broadcast %cst_116 : f32 to vector<64x64xf32>
    %401 = arith.select %399, %400, %395 : vector<64x64xi1>, vector<64x64xf32>
    %cst_117 = arith.constant dense<0xFF800000> : vector<64xf32>
    %402 = vector.multi_reduction <maximumf>, %401, %cst_117 [1] : vector<64x64xf32> to vector<64xf32>
    %403 = vector.shape_cast %402 : vector<64xf32> to vector<64x1xf32>
    %404 = vector.broadcast %403 : vector<64x1xf32> to vector<64x64xf32>
    %405 = arith.cmpf oeq, %401, %404 : vector<64x64xf32>
    %c64_i32 = arith.constant 64 : i32
    %406 = vector.broadcast %c64_i32 : i32 to vector<64x64xi32>
    %407 = arith.select %405, %397, %406 : vector<64x64xi1>, vector<64x64xi32>
    %cst_118 = arith.constant dense<2147483647> : vector<64xi32>
    %408 = vector.multi_reduction <minsi>, %407, %cst_118 [1] : vector<64x64xi32> to vector<64xi32>
    %409 = vector.shape_cast %408 : vector<64xi32> to vector<64x1xi32>
    %c0_119 = arith.constant 0 : index
    %c0_120 = arith.constant 0 : index
    %410 = vector.load %arg8[%c0_119, %c0_120] : memref<64x1xi32, #tpu.memory_space<vmem>>, vector<64x1xi32>
    tpu.vector_store %arg8[%c0_119, %c0_120], %409 {strides = array<i32>} : memref<64x1xi32, #tpu.memory_space<vmem>>, vector<64x1xi32>,
    return
  }
}

</mosaic_0001>

<bundles_post_ra>
// kernel: decoder_forward.1
= control target key start
LH: loop header
LB: loop body
LE: loop exit
PB: predicated region body
PF: predicated region fallthrough
CT: control target
= control target key end

     0   :  { %16 = vsyncpa [#allocation5], 0  ;;  %s2532_s0 = inlined_call_operand.vmem [shape: bf16[64,32], index: 0, kind: input, shape index: {}]   ;;  %s2533_s1 = inlined_call_operand.vmem [shape: bf16[2,32,128], index: 1, kind: input, shape index: {}]   ;;  %s2534_s2 = inlined_call_operand.vmem [shape: bf16[2,32,128], index: 2, kind: input, shape index: {}]   ;;  %s2535_s3 = inlined_call_operand.vmem [shape: f32[2,1,128], index: 3, kind: input, shape index: {}]   ;;  %s2536_s4 = inlined_call_operand.vmem [shape: bf16[64,32], index: 4, kind: input, shape index: {}]   ;;  %s2537_s5 = inlined_call_operand.vmem [shape: f32[2,8,32], index: 5, kind: input, shape index: {}]   ;;  %s2538_s6 = inlined_call_operand.vmem [shape: f32[2,8,32], index: 6, kind: input, shape index: {}]   ;;  %s2539_s7 = inlined_call_operand.vmem [shape: f32[64,64], index: 7, kind: output, shape index: {0}]   ;;  %s2540_s8 = inlined_call_operand.vmem [shape: s32[64,1], index: 8, kind: output, shape index: {1}]   ;;  %s2541_s9 = inlined_call_operand.hbm [shape: f32[2,8,32], index: 9, kind: output, shape index: {2}]   ;;  %s2542_s10 = inlined_call_operand.hbm [shape: f32[2,8,32], index: 10, kind: output, shape index: {3}]  }
   0x1   :  { %v1749_v0 = vld [vmem:[%s2533_s1 + $0x8] sm:$0xff]  ;;  %v1748_v2 = vld [vmem:[%s2533_s1] sm:$0xff] }
   0x2   :  { %v2027_v1 = vld [vmem:[%s2534_s2 + $0x8] sm:$0xff]  ;;  %114 = vmatpush.bf16.msra.mxu1 %v1749_v0  ;;  %1764 = vmatpush.bf16.msra.mxu2 %v1749_v0 }
   0x3   :  { %1765 = vmatpush.bf16.msra.mxu3 %v1749_v0  ;;  %748 = vmatpush.bf16.msra.mxu0 %v2027_v1 }
   0x4   :  { %17 = vsyncpa [#allocation7], 0  ;;  %v1756_v3 = vld [vmem:[%s2532_s0] sm:$0xff]  ;;  %vm95_vm0 = vcmask 261120   ;;  %s1959_s27 = smov 64   ;;  %s1960_s30 = smov 32  }
   0x5   :  { %v2039_v4 = vld [vmem:[%s2534_s2] sm:$0xff]  ;;  %v1757_v36 = vld [vmem:[%s2532_s0 + $0x8] sm:$0xff]  ;;  %v1759_v37 = vld [vmem:[%s2532_s0 + $0x18] sm:$0xff]  ;;  %s1591_s21 = sshll.u32 %s2541_s9, 4  ;;  %s1962_s22 = smov 96   ;;  %s1592_s21 = int_to_ptr.hbm [resolvable:$true] %s1591_s21 }
   0x6   :  { %115 = vmatpush.bf16.msra.mxu1 %v1748_v2  ;;  %1766 = vmatpush.bf16.msra.mxu2 %v1748_v2  ;;  %v150_v5 = vld [vmem:[%s2537_s5] sm:$0xff]  ;;  %v2080_v38 = vld [vmem:[%s2534_s2 + $0x18] sm:$0xff]  ;;  %v2094_v40 = vld [vmem:[%s2534_s2 + $0x10] sm:$0xff]  ;;  %s1963_s2 = smov 128   ;;  %s1964_s23 = smov 8  }
   0x7   :  { %1767 = vmatpush.bf16.msra.mxu3 %v1748_v2  ;;  %749 = vmatpush.bf16.msra.mxu0 %v2039_v4  ;;  %v156_v6 = vpack.c.bf16 %v150_v5, %v150_v5  ;;  %v2058_v9 = vld [vmem:[%s2535_s3] ss:$0 sm:$0xff]  ;;  %v2085_v39 = vld [vmem:[%s2533_s1 + $0x18] sm:$0xff]  ;;  %v2099_v41 = vld [vmem:[%s2533_s1 + $0x10] sm:$0xff]  ;;  %s1965_s26 = smov [#allocation6]   ;;  %s1604_s28 = sshll.u32 %s2542_s10, 4  ;;  %s1605_s28 = int_to_ptr.hbm [resolvable:$true] %s1604_s28 }
   0x8   :  { %v153_v15 = vld [vmem:[%s2538_s6] sm:$0xff]  ;;  %v1758_v42 = vld [vmem:[%s2532_s0 + $0x10] sm:$0xff]  ;;  %v1662_v46 = vld [vmem:[%s2537_s5 + $0x8] sm:$0xff]  ;;  %s1602_s0 = sshll.u32 %s1965_s26, 4  ;;  %s1603_s0 = int_to_ptr.vmem [resolvable:$true] %s1602_s0 }
   0x9   :  { %1657 = vmatmul.msk.bf16.vlgmr.msra.gmra.mxu1 %vm95_vm0, %v1756_v3  ;;  %1658 = vmatmul.msk.bf16.vlgmr.msra.gmra.mxu2 %vm95_vm0, %v1757_v36  ;;  %v228_v47 = vpack.c.bf16 %v1662_v46, %v1662_v46  ;;  %v1663_v48 = vld [vmem:[%s2538_s6 + $0x8] sm:$0xff]  ;;  %v2147_v61 = vld [vmem:[%s2535_s3 + $0x1] ss:$0 sm:$0xff] }
   0xa   :  { %179 = vmatpush.bf16.msrb.mxu1 %v2027_v1  ;;  %1660 = vmatmul.msk.bf16.vlgmr.msra.gmra.mxu3 %vm95_vm0, %v1759_v37 }
   0xb   :  { %251 = vmatpush.bf16.msrb.mxu2 %v2080_v38  ;;  %282 = vmatpush.bf16.msrb.mxu3 %v2085_v39 }
   0xc   :  { %942 = vmatpush.bf16.msrb.mxu0 %v2080_v38 }
   0xe   :  { %180 = vmatpush.bf16.msrb.mxu1 %v2039_v4 }
   0xf   :  { %252 = vmatpush.bf16.msrb.mxu2 %v2094_v40  ;;  %283 = vmatpush.bf16.msrb.mxu3 %v2099_v41 }
  0x10   :  { %943 = vmatpush.bf16.msrb.mxu0 %v2094_v40 }
  0x12   :  { %343 = vmatpush.bf16.msra.mxu1 %v2027_v1 }
  0x13   :  { %402 = vmatpush.bf16.msra.mxu2 %v2080_v38  ;;  %421 = vmatpush.bf16.msra.mxu3 %v2085_v39 }
  0x16   :  { %344 = vmatpush.bf16.msra.mxu1 %v2039_v4 }
  0x17   :  { %403 = vmatpush.bf16.msra.mxu2 %v2094_v40  ;;  %422 = vmatpush.bf16.msra.mxu3 %v2099_v41 }
  0x19   :  { %1672 = vmatmul.msk.bf16.vlgmr.msrb.gmra.mxu1 %vm95_vm0, %v156_v6  ;;  %1659 = vmatmul.msk.bf16.gmra.mxu2 %vm95_vm0, %v1758_v42 }
  0x1a   :  { %478 = vmatpush.bf16.msrb.mxu1 %v2027_v1 }
  0x1e   :  { %479 = vmatpush.bf16.msrb.mxu1 %v2039_v4 }
  0x29   :  { %1682 = vmatmul.msk.bf16.vlgmr.msrb.gmra.mxu2 %vm95_vm0, %v228_v47 }
  0x2a   :  { %537 = vmatpush.bf16.msrb.mxu2 %v2080_v38 }
  0x2e   :  { %538 = vmatpush.bf16.msrb.mxu2 %v2094_v40 }
  0x86   :  { %v117_v7 = vpop.f32.mrf.mxu1 }
  0x87   :  { %v118_v10 = vadd.f32 %v2058_v9, %v117_v7 }
  0x8c   :  { %v2130_v50 = vpop.f32.mrf.mxu2 }
  0x8d   :  { %v2138_v56 = vpop.f32.mrf.mxu3 }
  0x8e   :  { %v2053_v8 = vpop.f32.mrf.mxu1 }
  0x8f   :  { %v120_v58 = vadd.f32 %v2058_v9, %v2053_v8 }
  0x94   :  { %v2132_v51 = vpop.f32.mrf.mxu2 }
  0x95   :  { %v2140_v57 = vpop.f32.mrf.mxu3 }
  0x96   :  { %v182_v11 = vpop.f32.mrf.mxu1 }
  0x97   :  { %v186_v12 = vadd.f32 %v182_v11, %v118_v10 }
  0x99   :  { %1777 = vtanh.f32 %v186_v12  ;;  %v1673_v16 = vmul.f32 -1.442695, %v186_v12 }
  0x9b   :  { %1779 = vpow2.f32 %v1673_v16 }
  0x9c   :  { %v2134_v52 = vpop.f32.mrf.mxu2 }
  0x9e   :  { %v184_v13 = vpop.f32.mrf.mxu1 }
  0x9f   :  { %v1778_v14 = vpop.eup %1777 }
  0xa0   :  { %213 = vrot.lane.b32.xlu0 %v1778_v14, %s1959_s27 }
  0xa1   :  { %v1780_v17 = vpop.eup %1779 }
  0xa2   :  { %v190_v18 = vadd.f32 1.0, %v1780_v17 }
  0xa4   :  { %1781 = vrcp.f32 %v190_v18  ;;  %v202_v24 = vand.u32 2147483648, %v190_v18  ;;  %vm196_vm2 = vweird.f32 %v190_v18  ;;  %v200_v25 = vand.u32 2147483647, %v190_v18  ;;  %v2136_v53 = vpop.f32.mrf.mxu2 }
  0xa6   :  { %v203_v27 = vor.u32 1.1754944e-38, %v202_v24  ;;  %vm201_vm4 = vcmp.eq.f32.partialorder %v200_v25, 8.507059e+37 }
  0xa8   :  { %208 = vrot.lane.b32.xlu0 %v153_v15, %s1960_s30 }
  0xaa   :  { %v1782_v19 = vpop.eup %1781 }
  0xab   :  { %v192_v20 = vmul.f32 %v1782_v19, %v190_v18  ;;  %vm197_vm1 = vweird.f32 %v1782_v19 }
  0xac   :  { %vm198_vm3 = vmor %vm196_vm2, %vm197_vm1  ;;  %v254_v54 = vpop.f32.mrf.mxu2 }
  0xad   :  { %v193_v21 = vsub.f32 1.0, %v192_v20 }
  0xaf   :  { %v194_v22 = vmul.f32 %v1782_v19, %v193_v21 }
  0xb1   :  { %v195_v23 = vadd.f32 %v1782_v19, %v194_v22 }
  0xb3   :  { %v199_v26 = vsel %vm198_vm3, %v1782_v19, %v195_v23 }
  0xb4   :  { %v204_v29 = vsel %vm201_vm4, %v203_v27, %v199_v26  ;;  %v256_v55 = vpop.f32.mrf.mxu2 }
 0x112   :  { %v214_v28 = vpop.permute.xlu0 %213 }
 0x113   :  { %v216_v30 = vmul.f32 %v214_v28, %v204_v29 }
 0x115   :  { %218 = vrot.lane.b32.xlu1 %v216_v30, %s1960_s30 }
 0x11a   :  { %v209_v31 = vpop.permute.xlu0 %208 }
 0x11b   :  { %v211_v32 = vmul.f32 %v209_v31, %v204_v29 }
 0x187   :  { %v219_v33 = vpop.permute.xlu1 %218 }
 0x188   :  { %v2067_v34 = vadd.f32 %v219_v33, %v211_v32 }
 0x18a   :  { %1783 = vtanh.f32 %v2067_v34 }
 0x190   :  { %v1784_v35 = vpop.eup %1783 }
 0x191   :  { %224 = vrot.lane.b32.xlu1 %v1784_v35, %s1959_s27 }
 0x199   :  { %311 = vrot.lane.b32.xlu1 %v1663_v48, %s1960_s30 }
 0x203   :  { %v225_v43 = vpop.permute.xlu1 %224 }
 0x204   :  { %v227_v44 = vmul.f32 %v225_v43, %v204_v29 }
 0x206   :  { %v229_v45 = vpack.c.bf16 %v227_v44, %v227_v44 }
 0x208   :  { %259 = vrot.lane.b32.xlu2 %v229_v45, %s1960_s30 }
 0x20b   :  { %v312_v43 = vpop.permute.xlu1 %311 }
 0x262   :  { %v260_v49 = vpop.permute.xlu2 %259 }
 0x263   :  { %1691 = vmatmul.msk.bf16.vlgmr.msrb.gmra.mxu3 %vm95_vm0, %v260_v49  ;;  %1693 = vmatmul.msk.bf16.vlgmr.msra.gmra.mxu1 %vm95_vm0, %v260_v49 }
 0x264   :  { %556 = vmatpush.bf16.msrb.mxu3 %v2085_v39  ;;  %613 = vmatpush.bf16.msra.mxu1 %v2027_v1 }
 0x268   :  { %557 = vmatpush.bf16.msrb.mxu3 %v2099_v41  ;;  %614 = vmatpush.bf16.msra.mxu1 %v2039_v4 }
 0x2e0   :  { %v346_v59 = vpop.f32.mrf.mxu1 }
 0x2e1   :  { %v350_v60 = vadd.f32 %v346_v59, %v120_v58 }
 0x2e3   :  { %1785 = vtanh.f32 %v350_v60  ;;  %v1694_v11 = vmul.f32 -1.442695, %v350_v60 }
 0x2e6   :  { %v285_v62 = vpop.f32.mrf.mxu3 }
 0x2e7   :  { %v286_v63 = vadd.f32 %v285_v62, %v254_v54 }
 0x2e8   :  { %v348_v0 = vpop.f32.mrf.mxu1 }
 0x2e9   :  { %v1786_v2 = vpop.eup %1785  ;;  %v289_v3 = vadd.f32 %v2147_v61, %v286_v63 }
 0x2ea   :  { %373 = vrot.lane.b32.xlu0 %v1786_v2, %s1959_s27 }
 0x2eb   :  { %1787 = vtanh.f32 %v289_v3  ;;  %v1692_v7 = vmul.f32 -1.442695, %v289_v3 }
 0x2ed   :  { %1789 = vpow2.f32 %v1692_v7 }
 0x2ee   :  { %v287_v5 = vpop.f32.mrf.mxu3 }
 0x2f1   :  { %v1788_v6 = vpop.eup %1787 }
 0x2f2   :  { %316 = vrot.lane.b32.xlu2 %v1788_v6, %s1959_s27  ;;  %v123_v6 = vadd.f32 %v2058_v9, %v2130_v50 }
 0x2f3   :  { %v1790_v8 = vpop.eup %1789 }
 0x2f4   :  { %v293_v10 = vadd.f32 1.0, %v1790_v8 }
 0x2f6   :  { %1791 = vrcp.f32 %v293_v10  ;;  %v305_v20 = vand.u32 2147483648, %v293_v10  ;;  %vm299_vm6 = vweird.f32 %v293_v10  ;;  %v303_v21 = vand.u32 2147483647, %v293_v10 }
 0x2f7   :  { %1793 = vpow2.f32 %v1694_v11 }
 0x2f8   :  { %v306_v24 = vor.u32 1.1754944e-38, %v305_v20  ;;  %vm304_vm8 = vcmp.eq.f32.partialorder %v303_v21, 8.507059e+37 }
 0x2fc   :  { %v1792_v12 = vpop.eup %1791 }
 0x2fd   :  { %v1794_v13 = vpop.eup %1793  ;;  %v295_v14 = vmul.f32 %v1792_v12, %v293_v10  ;;  %vm300_vm5 = vweird.f32 %v1792_v12 }
 0x2fe   :  { %v354_v15 = vadd.f32 1.0, %v1794_v13  ;;  %vm301_vm7 = vmor %vm299_vm6, %vm300_vm5 }
 0x2ff   :  { %v296_v16 = vsub.f32 1.0, %v295_v14 }
 0x300   :  { %1795 = vrcp.f32 %v354_v15  ;;  %v366_v31 = vand.u32 2147483648, %v354_v15  ;;  %vm360_vm10 = vweird.f32 %v354_v15  ;;  %v364_v32 = vand.u32 2147483647, %v354_v15 }
 0x301   :  { %v297_v17 = vmul.f32 %v1792_v12, %v296_v16 }
 0x302   :  { %v367_v35 = vor.u32 1.1754944e-38, %v366_v31  ;;  %vm365_vm12 = vcmp.eq.f32.partialorder %v364_v32, 8.507059e+37 }
 0x303   :  { %v298_v18 = vadd.f32 %v1792_v12, %v297_v17 }
 0x305   :  { %v302_v22 = vsel %vm301_vm7, %v1792_v12, %v298_v18 }
 0x306   :  { %v1796_v19 = vpop.eup %1795  ;;  %v307_v25 = vsel %vm304_vm8, %v306_v24, %v302_v22 }
 0x307   :  { %v356_v23 = vmul.f32 %v1796_v19, %v354_v15  ;;  %vm361_vm9 = vweird.f32 %v1796_v19  ;;  %v314_v44 = vmul.f32 %v312_v43, %v307_v25 }
 0x308   :  { %vm362_vm11 = vmor %vm360_vm10, %vm361_vm9 }
 0x309   :  { %v357_v28 = vsub.f32 1.0, %v356_v23 }
 0x30b   :  { %v358_v29 = vmul.f32 %v1796_v19, %v357_v28 }
 0x30d   :  { %v359_v30 = vadd.f32 %v1796_v19, %v358_v29 }
 0x30f   :  { %v363_v33 = vsel %vm362_vm11, %v1796_v19, %v359_v30 }
 0x310   :  { %v368_v37 = vsel %vm365_vm12, %v367_v35, %v363_v33 }
 0x311   :  { %v371_v48 = vmul.f32 %v368_v37, %v2067_v34 }
 0x34c   :  { %v317_v26 = vpop.permute.xlu2 %316 }
 0x34d   :  { %v319_v27 = vmul.f32 %v317_v26, %v307_v25 }
 0x34f   :  { %321 = vrot.lane.b32.xlu2 %v319_v27, %s1960_s30 }
 0x35c   :  { %v374_v36 = vpop.permute.xlu0 %373 }
 0x35d   :  { %v376_v42 = vmul.f32 %v374_v36, %v368_v37 }
 0x35f   :  { %378 = vrot.lane.b32.xlu0 %v376_v42, %s1960_s30 }
 0x3a9   :  { %v322_v45 = vpop.permute.xlu2 %321 }
 0x3aa   :  { %v2154_v46 = vadd.f32 %v322_v45, %v314_v44 }
 0x3ac   :  { %1797 = vtanh.f32 %v2154_v46 }
 0x3b2   :  { %v1798_v47 = vpop.eup %1797 }
 0x3b3   :  { %327 = vrot.lane.b32.xlu1 %v1798_v47, %s1959_s27 }
 0x3d1   :  { %v379_v49 = vpop.permute.xlu0 %378 }
 0x3d2   :  { %v2159_v54 = vadd.f32 %v379_v49, %v371_v48 }
 0x3d4   :  { %1799 = vtanh.f32 %v2159_v54 }
 0x3da   :  { %v1800_v55 = vpop.eup %1799 }
 0x3db   :  { %384 = vrot.lane.b32.xlu2 %v1800_v55, %s1959_s27 }
 0x425   :  { %v328_v58 = vpop.permute.xlu1 %327 }
 0x426   :  { %v2163_v59 = vmul.f32 %v328_v58, %v307_v25 }
 0x428   :  { %v388_v60 = vpack.c.bf16 %v2163_v59, %v2163_v59 }
 0x42a   :  { %391 = vrot.lane.b32.xlu0 %v388_v60, %s1960_s30 }
 0x435   :  { %v385_v62 = vpop.permute.xlu2 %384 }
 0x436   :  { %v387_v63 = vmul.f32 %v385_v62, %v368_v37 }
 0x438   :  { %v389_v0 = vpack.c.bf16 %v387_v63, %v387_v63 }
 0x43a   :  { %410 = vrot.lane.b32.xlu1 %v389_v0, %s1960_s30 }
 0x49c   :  { %v392_v34 = vpop.permute.xlu0 %391 }
 0x49d   :  { %1695 = vmatmul.msk.bf16.vlgmr.msra.gmra.mxu2 %vm95_vm0, %v392_v34 }
 0x49e   :  { %672 = vmatpush.bf16.msra.mxu2 %v2080_v38 }
 0x4a2   :  { %673 = vmatpush.bf16.msra.mxu2 %v2094_v40 }
 0x4ac   :  { %v411_v2 = vpop.permute.xlu1 %410 }
 0x4ad   :  { %1696 = vmatmul.msk.bf16.vlgmr.msra.gmra.mxu3 %vm95_vm0, %v411_v2  ;;  %1698 = vmatmul.msk.bf16.vlgmr.msrb.gmra.mxu1 %vm95_vm0, %v411_v2 }
 0x4ae   :  { %691 = vmatpush.bf16.msra.mxu3 %v2085_v39  ;;  %807 = vmatpush.bf16.msrb.mxu1 %v2080_v38 }
 0x4b2   :  { %692 = vmatpush.bf16.msra.mxu3 %v2099_v41  ;;  %808 = vmatpush.bf16.msrb.mxu1 %v2094_v40 }
 0x520   :  { %v405_v3 = vpop.f32.mrf.mxu2 }
 0x528   :  { %v407_v5 = vpop.f32.mrf.mxu2 }
 0x52a   :  { %v481_v7 = vpop.f32.mrf.mxu1 }
 0x52b   :  { %v485_v8 = vadd.f32 %v481_v7, %v123_v6 }
 0x52d   :  { %1801 = vtanh.f32 %v485_v8  ;;  %v1699_v19 = vmul.f32 -1.442695, %v485_v8 }
 0x530   :  { %v424_v10 = vpop.f32.mrf.mxu3 }
 0x531   :  { %v425_v11 = vadd.f32 %v424_v10, %v405_v3 }
 0x532   :  { %v483_v12 = vpop.f32.mrf.mxu1 }
 0x533   :  { %v1802_v13 = vpop.eup %1801  ;;  %v428_v14 = vadd.f32 %v2147_v61, %v425_v11 }
 0x534   :  { %508 = vrot.lane.b32.xlu0 %v1802_v13, %s1959_s27 }
 0x535   :  { %1803 = vtanh.f32 %v428_v14  ;;  %v1697_v17 = vmul.f32 -1.442695, %v428_v14 }
 0x537   :  { %1805 = vpow2.f32 %v1697_v17 }
 0x538   :  { %v426_v15 = vpop.f32.mrf.mxu3 }
 0x539   :  { %v125_v15 = vadd.f32 %v2058_v9, %v2132_v51 }
 0x53b   :  { %v1804_v16 = vpop.eup %1803 }
 0x53c   :  { %451 = vrot.lane.b32.xlu2 %v1804_v16, %s1959_s27 }
 0x53d   :  { %v1806_v18 = vpop.eup %1805 }
 0x53e   :  { %v432_v50 = vadd.f32 1.0, %v1806_v18 }
 0x540   :  { %1807 = vrcp.f32 %v432_v50  ;;  %v444_v28 = vand.u32 2147483648, %v432_v50  ;;  %vm438_vm14 = vweird.f32 %v432_v50  ;;  %v442_v29 = vand.u32 2147483647, %v432_v50 }
 0x541   :  { %1809 = vpow2.f32 %v1699_v19 }
 0x542   :  { %v445_v32 = vor.u32 1.1754944e-38, %v444_v28  ;;  %vm443_vm1 = vcmp.eq.f32.partialorder %v442_v29, 8.507059e+37 }
 0x546   :  { %v1808_v20 = vpop.eup %1807 }
 0x547   :  { %v1810_v21 = vpop.eup %1809  ;;  %v434_v22 = vmul.f32 %v1808_v20, %v432_v50  ;;  %vm439_vm13 = vweird.f32 %v1808_v20 }
 0x548   :  { %v489_v23 = vadd.f32 1.0, %v1810_v21  ;;  %vm440_vm15 = vmor %vm438_vm14, %vm439_vm13 }
 0x549   :  { %v435_v24 = vsub.f32 1.0, %v434_v22 }
 0x54a   :  { %1811 = vrcp.f32 %v489_v23  ;;  %v501_v44 = vand.u32 2147483648, %v489_v23  ;;  %vm495_vm3 = vweird.f32 %v489_v23  ;;  %v499_v45 = vand.u32 2147483647, %v489_v23 }
 0x54b   :  { %v436_v25 = vmul.f32 %v1808_v20, %v435_v24 }
 0x54c   :  { %v502_v48 = vor.u32 1.1754944e-38, %v501_v44  ;;  %vm500_vm5 = vcmp.eq.f32.partialorder %v499_v45, 8.507059e+37 }
 0x54d   :  { %v437_v26 = vadd.f32 %v1808_v20, %v436_v25 }
 0x54f   :  { %v441_v30 = vsel %vm440_vm15, %v1808_v20, %v437_v26 }
 0x550   :  { %v1812_v27 = vpop.eup %1811  ;;  %v446_v35 = vsel %vm443_vm1, %v445_v32, %v441_v30 }
 0x551   :  { %v491_v31 = vmul.f32 %v1812_v27, %v489_v23  ;;  %vm496_vm2 = vweird.f32 %v1812_v27  ;;  %v449_v0 = vmul.f32 %v446_v35, %v2154_v46 }
 0x552   :  { %vm497_vm4 = vmor %vm495_vm3, %vm496_vm2 }
 0x553   :  { %v492_v37 = vsub.f32 1.0, %v491_v31 }
 0x555   :  { %v493_v42 = vmul.f32 %v1812_v27, %v492_v37 }
 0x557   :  { %v494_v43 = vadd.f32 %v1812_v27, %v493_v42 }
 0x559   :  { %v498_v47 = vsel %vm497_vm4, %v1812_v27, %v494_v43 }
 0x55a   :  { %v503_v55 = vsel %vm500_vm5, %v502_v48, %v498_v47 }
 0x55b   :  { %v506_v60 = vmul.f32 %v503_v55, %v2159_v54 }
 0x596   :  { %v452_v33 = vpop.permute.xlu2 %451 }
 0x597   :  { %v454_v36 = vmul.f32 %v452_v33, %v446_v35 }
 0x599   :  { %456 = vrot.lane.b32.xlu1 %v454_v36, %s1960_s30 }
 0x5a6   :  { %v509_v49 = vpop.permute.xlu0 %508 }
 0x5a7   :  { %v511_v58 = vmul.f32 %v509_v49, %v503_v55 }
 0x5a9   :  { %513 = vrot.lane.b32.xlu2 %v511_v58, %s1960_s30 }
 0x603   :  { %v514_v62 = vpop.permute.xlu2 %513 }
 0x604   :  { %v2186_v63 = vadd.f32 %v514_v62, %v506_v60 }
 0x606   :  { %1813 = vtanh.f32 %v2186_v63 }
 0x60b   :  { %v457_v34 = vpop.permute.xlu1 %456 }
 0x60c   :  { %v1814_v2 = vpop.eup %1813  ;;  %v2190_v3 = vadd.f32 %v457_v34, %v449_v0 }
 0x60d   :  { %519 = vrot.lane.b32.xlu1 %v1814_v2, %s1959_s27 }
 0x60e   :  { %1815 = vtanh.f32 %v2190_v3 }
 0x614   :  { %v1816_v5 = vpop.eup %1815 }
 0x615   :  { %462 = vrot.lane.b32.xlu0 %v1816_v5, %s1959_s27 }
 0x67f   :  { %v520_v6 = vpop.permute.xlu1 %519 }
 0x680   :  { %v522_v54 = vmul.f32 %v520_v6, %v503_v55 }
 0x682   :  { %v524_v7 = vpack.c.bf16 %v522_v54, %v522_v54 }
 0x684   :  { %545 = vrot.lane.b32.xlu0 %v524_v7, %s1960_s30 }
 0x687   :  { %v463_v8 = vpop.permute.xlu0 %462 }
 0x688   :  { %v2196_v10 = vmul.f32 %v463_v8, %v446_v35 }
 0x68a   :  { %v523_v46 = vpack.c.bf16 %v2196_v10, %v2196_v10 }
 0x68c   :  { %526 = vrot.lane.b32.xlu2 %v523_v46, %s1960_s30 }
 0x6e6   :  { %v527_v11 = vpop.permute.xlu2 %526 }
 0x6e7   :  { %1700 = vmatmul.msk.bf16.vlgmr.msrb.gmra.mxu2 %vm95_vm0, %v527_v11 }
 0x6e8   :  { %826 = vmatpush.bf16.msrb.mxu2 %v2085_v39 }
 0x6ec   :  { %827 = vmatpush.bf16.msrb.mxu2 %v2099_v41 }
 0x6f6   :  { %v546_v12 = vpop.permute.xlu0 %545 }
 0x6f7   :  { %1701 = vmatmul.msk.bf16.vlgmr.msrb.gmra.mxu3 %vm95_vm0, %v546_v12  ;;  %1703 = vmatmul.msk.bf16.vlgmr.msra.gmra.mxu1 %vm95_vm0, %v546_v12 }
 0x6f8   :  { %883 = vmatpush.bf16.msrb.mxu3 %v2027_v1  ;;  %961 = vmatpush.bf16.msra.mxu1 %v2085_v39 }
 0x6fc   :  { %884 = vmatpush.bf16.msrb.mxu3 %v2039_v4  ;;  %962 = vmatpush.bf16.msra.mxu1 %v2099_v41 }
 0x76a   :  { %v540_v13 = vpop.f32.mrf.mxu2 }
 0x772   :  { %v542_v14 = vpop.f32.mrf.mxu2 }
 0x774   :  { %v616_v16 = vpop.f32.mrf.mxu1 }
 0x775   :  { %v620_v17 = vadd.f32 %v616_v16, %v125_v15 }
 0x777   :  { %1817 = vtanh.f32 %v620_v17  ;;  %v1704_v24 = vmul.f32 -1.442695, %v620_v17 }
 0x77a   :  { %v559_v18 = vpop.f32.mrf.mxu3 }
 0x77b   :  { %v560_v50 = vadd.f32 %v559_v18, %v540_v13 }
 0x77c   :  { %v618_v19 = vpop.f32.mrf.mxu1 }
 0x77d   :  { %v1818_v20 = vpop.eup %1817  ;;  %v563_v21 = vadd.f32 %v2147_v61, %v560_v50 }
 0x77e   :  { %643 = vrot.lane.b32.xlu2 %v1818_v20, %s1959_s27  ;;  %v128_v20 = vadd.f32 %v2058_v9, %v2134_v52 }
 0x77f   :  { %1819 = vtanh.f32 %v563_v21  ;;  %v1702_v29 = vmul.f32 -1.442695, %v563_v21 }
 0x780   :  { %1821 = vpow2.f32 %v1704_v24 }
 0x782   :  { %v561_v22 = vpop.f32.mrf.mxu3 }
 0x785   :  { %v1820_v23 = vpop.eup %1819 }
 0x786   :  { %586 = vrot.lane.b32.xlu1 %v1820_v23, %s1959_s27  ;;  %v1822_v25 = vpop.eup %1821 }
 0x787   :  { %v624_v51 = vadd.f32 1.0, %v1822_v25 }
 0x789   :  { %1823 = vrcp.f32 %v624_v51  ;;  %v636_v32 = vand.u32 2147483648, %v624_v51  ;;  %vm630_vm7 = vweird.f32 %v624_v51  ;;  %v634_v33 = vand.u32 2147483647, %v624_v51 }
 0x78a   :  { %1825 = vpow2.f32 %v1702_v29 }
 0x78b   :  { %v637_v37 = vor.u32 1.1754944e-38, %v636_v32  ;;  %vm635_vm9 = vcmp.eq.f32.partialorder %v634_v33, 8.507059e+37 }
 0x78f   :  { %v1824_v26 = vpop.eup %1823 }
 0x790   :  { %v626_v27 = vmul.f32 %v1824_v26, %v624_v51  ;;  %vm631_vm6 = vweird.f32 %v1824_v26  ;;  %v1826_v35 = vpop.eup %1825 }
 0x791   :  { %vm632_vm8 = vmor %vm630_vm7, %vm631_vm6  ;;  %v567_v42 = vadd.f32 1.0, %v1826_v35 }
 0x792   :  { %v627_v28 = vsub.f32 1.0, %v626_v27 }
 0x793   :  { %1827 = vrcp.f32 %v567_v42  ;;  %v579_v60 = vand.u32 2147483648, %v567_v42  ;;  %vm573_vm11 = vweird.f32 %v567_v42  ;;  %v577_v62 = vand.u32 2147483647, %v567_v42 }
 0x794   :  { %v628_v30 = vmul.f32 %v1824_v26, %v627_v28 }
 0x795   :  { %v580_v34 = vor.u32 1.1754944e-38, %v579_v60  ;;  %vm578_vm13 = vcmp.eq.f32.partialorder %v577_v62, 8.507059e+37 }
 0x796   :  { %v629_v31 = vadd.f32 %v1824_v26, %v628_v30 }
 0x798   :  { %v633_v36 = vsel %vm632_vm8, %v1824_v26, %v629_v31 }
 0x799   :  { %v638_v44 = vsel %vm635_vm9, %v637_v37, %v633_v36  ;;  %v1828_v47 = vpop.eup %1827 }
 0x79a   :  { %v569_v48 = vmul.f32 %v1828_v47, %v567_v42  ;;  %vm574_vm10 = vweird.f32 %v1828_v47  ;;  %v641_v54 = vmul.f32 %v638_v44, %v2186_v63 }
 0x79b   :  { %vm575_vm12 = vmor %vm573_vm11, %vm574_vm10 }
 0x79c   :  { %v570_v49 = vsub.f32 1.0, %v569_v48 }
 0x79e   :  { %v571_v55 = vmul.f32 %v1828_v47, %v570_v49 }
 0x7a0   :  { %v572_v58 = vadd.f32 %v1828_v47, %v571_v55 }
 0x7a2   :  { %v576_v0 = vsel %vm575_vm12, %v1828_v47, %v572_v58 }
 0x7a3   :  { %v581_v5 = vsel %vm578_vm13, %v580_v34, %v576_v0 }
 0x7a4   :  { %v584_v11 = vmul.f32 %v581_v5, %v2190_v3 }
 0x7d8   :  { %v644_v43 = vpop.permute.xlu2 %643 }
 0x7d9   :  { %v646_v45 = vmul.f32 %v644_v43, %v638_v44 }
 0x7db   :  { %648 = vrot.lane.b32.xlu1 %v646_v45, %s1960_s30 }
 0x7f8   :  { %v587_v2 = vpop.permute.xlu1 %586 }
 0x7f9   :  { %v589_v6 = vmul.f32 %v587_v2, %v581_v5 }
 0x7fb   :  { %591 = vrot.lane.b32.xlu0 %v589_v6, %s1960_s30 }
 0x84d   :  { %v649_v7 = vpop.permute.xlu1 %648 }
 0x84e   :  { %v2218_v8 = vadd.f32 %v649_v7, %v641_v54 }
 0x850   :  { %1829 = vtanh.f32 %v2218_v8 }
 0x856   :  { %v1830_v46 = vpop.eup %1829 }
 0x857   :  { %654 = vrot.lane.b32.xlu0 %v1830_v46, %s1959_s27 }
 0x86d   :  { %v592_v12 = vpop.permute.xlu0 %591 }
 0x86e   :  { %v2223_v13 = vadd.f32 %v592_v12, %v584_v11 }
 0x870   :  { %1831 = vtanh.f32 %v2223_v13 }
 0x876   :  { %v1832_v14 = vpop.eup %1831 }
 0x877   :  { %597 = vrot.lane.b32.xlu2 %v1832_v14, %s1959_s27 }
 0x8c9   :  { %v655_v15 = vpop.permute.xlu0 %654 }
 0x8ca   :  { %v657_v63 = vmul.f32 %v655_v15, %v638_v44 }
 0x8cc   :  { %v659_v16 = vpack.c.bf16 %v657_v63, %v657_v63 }
 0x8ce   :  { %680 = vrot.lane.b32.xlu2 %v659_v16, %s1960_s30 }
 0x8d1   :  { %v598_v17 = vpop.permute.xlu2 %597 }
 0x8d2   :  { %v2228_v18 = vmul.f32 %v598_v17, %v581_v5 }
 0x8d4   :  { %v658_v50 = vpack.c.bf16 %v2228_v18, %v2228_v18 }
 0x8d6   :  { %661 = vrot.lane.b32.xlu1 %v658_v50, %s1960_s30 }
 0x928   :  { %v681_v3 = vpop.permute.xlu2 %680 }
 0x929   :  { %1706 = vmatmul.msk.bf16.vlgmr.msra.gmra.mxu3 %vm95_vm0, %v681_v3  ;;  %1708 = vmatmul.msk.bf16.vlgmr.msra.gmra.mxu0 %vm95_vm0, %v681_v3 }
 0x92a   :  { %1096 = vmatpush.bf16.msra.mxu0 %v2085_v39  ;;  %1077 = vmatpush.bf16.msra.mxu3 %v2080_v38 }
 0x92e   :  { %1097 = vmatpush.bf16.msra.mxu0 %v2099_v41  ;;  %1078 = vmatpush.bf16.msra.mxu3 %v2094_v40 }
 0x948   :  { %v662_v19 = vpop.permute.xlu1 %661 }
 0x949   :  { %1705 = vmatmul.msk.bf16.vlgmr.msra.gmra.mxu2 %vm95_vm0, %v662_v19 }
 0x94a   :  { %1018 = vmatpush.bf16.msra.mxu2 %v2027_v1 }
 0x94e   :  { %1019 = vmatpush.bf16.msra.mxu2 %v2039_v4 }
 0x9a6   :  { %v751_v21 = vpop.f32.mrf.mxu0 }
 0x9a7   :  { %v755_v22 = vadd.f32 %v751_v21, %v128_v20 }
 0x9a9   :  { %1833 = vtanh.f32 %v755_v22  ;;  %v1709_v31 = vmul.f32 -1.442695, %v755_v22 }
 0x9ac   :  { %v694_v23 = vpop.f32.mrf.mxu3 }
 0x9ae   :  { %v753_v24 = vpop.f32.mrf.mxu0 }
 0x9af   :  { %v1834_v25 = vpop.eup %1833 }
 0x9b0   :  { %778 = vrot.lane.b32.xlu0 %v1834_v25, %s1959_s27 }
 0x9b4   :  { %v696_v51 = vpop.f32.mrf.mxu3 }
 0x9cc   :  { %v675_v26 = vpop.f32.mrf.mxu2 }
 0x9cd   :  { %v695_v27 = vadd.f32 %v694_v23, %v675_v26 }
 0x9cf   :  { %v698_v28 = vadd.f32 %v2147_v61, %v695_v27  ;;  %v130_v27 = vadd.f32 %v2058_v9, %v2136_v53 }
 0x9d1   :  { %1835 = vtanh.f32 %v698_v28  ;;  %v1707_v44 = vmul.f32 -1.442695, %v698_v28 }
 0x9d2   :  { %1837 = vpow2.f32 %v1709_v31 }
 0x9d4   :  { %v677_v29 = vpop.f32.mrf.mxu2 }
 0x9d7   :  { %v1836_v30 = vpop.eup %1835 }
 0x9d8   :  { %721 = vrot.lane.b32.xlu1 %v1836_v30, %s1959_s27  ;;  %v1838_v52 = vpop.eup %1837 }
 0x9d9   :  { %v759_v32 = vadd.f32 1.0, %v1838_v52 }
 0x9db   :  { %1839 = vrcp.f32 %v759_v32  ;;  %v771_v43 = vand.u32 2147483648, %v759_v32  ;;  %vm765_vm15 = vweird.f32 %v759_v32  ;;  %v769_v45 = vand.u32 2147483647, %v759_v32 }
 0x9dc   :  { %1841 = vpow2.f32 %v1707_v44 }
 0x9dd   :  { %v772_v48 = vor.u32 1.1754944e-38, %v771_v43  ;;  %vm770_vm2 = vcmp.eq.f32.partialorder %v769_v45, 8.507059e+37 }
 0x9e1   :  { %v1840_v33 = vpop.eup %1839 }
 0x9e2   :  { %v761_v35 = vmul.f32 %v1840_v33, %v759_v32  ;;  %vm766_vm14 = vweird.f32 %v1840_v33  ;;  %v1842_v60 = vpop.eup %1841 }
 0x9e3   :  { %vm767_vm1 = vmor %vm765_vm15, %vm766_vm14  ;;  %v702_v62 = vadd.f32 1.0, %v1842_v60 }
 0x9e4   :  { %v762_v36 = vsub.f32 1.0, %v761_v35 }
 0x9e5   :  { %1843 = vrcp.f32 %v702_v62  ;;  %v714_v54 = vand.u32 2147483648, %v702_v62  ;;  %vm708_vm4 = vweird.f32 %v702_v62  ;;  %v712_v7 = vand.u32 2147483647, %v702_v62 }
 0x9e6   :  { %v763_v37 = vmul.f32 %v1840_v33, %v762_v36 }
 0x9e7   :  { %v715_v11 = vor.u32 1.1754944e-38, %v714_v54  ;;  %vm713_vm6 = vcmp.eq.f32.partialorder %v712_v7, 8.507059e+37 }
 0x9e8   :  { %v764_v42 = vadd.f32 %v1840_v33, %v763_v37 }
 0x9ea   :  { %v768_v47 = vsel %vm767_vm1, %v1840_v33, %v764_v42 }
 0x9eb   :  { %v773_v55 = vsel %vm770_vm2, %v772_v48, %v768_v47  ;;  %v1844_v0 = vpop.eup %1843 }
 0x9ec   :  { %v704_v34 = vmul.f32 %v1844_v0, %v702_v62  ;;  %vm709_vm3 = vweird.f32 %v1844_v0  ;;  %v776_v63 = vmul.f32 %v773_v55, %v2218_v8 }
 0x9ed   :  { %vm710_vm5 = vmor %vm708_vm4, %vm709_vm3 }
 0x9ee   :  { %v705_v2 = vsub.f32 1.0, %v704_v34 }
 0x9f0   :  { %v706_v5 = vmul.f32 %v1844_v0, %v705_v2 }
 0x9f2   :  { %v707_v6 = vadd.f32 %v1844_v0, %v706_v5 }
 0x9f4   :  { %v711_v46 = vsel %vm710_vm5, %v1844_v0, %v707_v6 }
 0x9f5   :  { %v716_v14 = vsel %vm713_vm6, %v715_v11, %v711_v46 }
 0x9f6   :  { %v719_v3 = vmul.f32 %v716_v14, %v2223_v13 }
 0xa22   :  { %v779_v49 = vpop.permute.xlu0 %778 }
 0xa23   :  { %v781_v58 = vmul.f32 %v779_v49, %v773_v55 }
 0xa25   :  { %783 = vrot.lane.b32.xlu2 %v781_v58, %s1960_s30 }
 0xa4a   :  { %v722_v12 = vpop.permute.xlu1 %721 }
 0xa4b   :  { %v724_v15 = vmul.f32 %v722_v12, %v716_v14 }
 0xa4d   :  { %726 = vrot.lane.b32.xlu0 %v724_v15, %s1960_s30 }
 0xa7f   :  { %v784_v16 = vpop.permute.xlu2 %783 }
 0xa80   :  { %v2250_v17 = vadd.f32 %v784_v16, %v776_v63 }
 0xa82   :  { %1845 = vtanh.f32 %v2250_v17 }
 0xa88   :  { %v1846_v50 = vpop.eup %1845 }
 0xa89   :  { %789 = vrot.lane.b32.xlu1 %v1846_v50, %s1959_s27 }
 0xabf   :  { %v727_v19 = vpop.permute.xlu0 %726 }
 0xac0   :  { %v2255_v20 = vadd.f32 %v727_v19, %v719_v3 }
 0xac2   :  { %1847 = vtanh.f32 %v2255_v20 }
 0xac8   :  { %v1848_v21 = vpop.eup %1847 }
 0xac9   :  { %732 = vrot.lane.b32.xlu2 %v1848_v21, %s1959_s27 }
 0xafb   :  { %v790_v22 = vpop.permute.xlu1 %789 }
 0xafc   :  { %v792_v8 = vmul.f32 %v790_v22, %v773_v55 }
 0xafe   :  { %v794_v23 = vpack.c.bf16 %v792_v8, %v792_v8 }
 0xb00   :  { %815 = vrot.lane.b32.xlu0 %v794_v23, %s1960_s30 }
 0xb23   :  { %v733_v24 = vpop.permute.xlu2 %732 }
 0xb24   :  { %v2260_v25 = vmul.f32 %v733_v24, %v716_v14 }
 0xb26   :  { %v793_v51 = vpack.c.bf16 %v2260_v25, %v2260_v25 }
 0xb28   :  { %796 = vrot.lane.b32.xlu1 %v793_v51, %s1960_s30 }
 0xb72   :  { %v816_v13 = vpop.permute.xlu0 %815 }
 0xb73   :  { %1711 = vmatmul.msk.bf16.vlgmr.msrb.gmra.mxu2 %vm95_vm0, %v816_v13  ;;  %1713 = vmatmul.msk.bf16.vlgmr.msrb.gmra.mxu3 %vm95_vm0, %v816_v13 }
 0xb74   :  { %1231 = vmatpush.bf16.msrb.mxu3 %v2085_v39  ;;  %1212 = vmatpush.bf16.msrb.mxu2 %v2080_v38 }
 0xb78   :  { %1232 = vmatpush.bf16.msrb.mxu3 %v2099_v41  ;;  %1213 = vmatpush.bf16.msrb.mxu2 %v2094_v40 }
 0xb9a   :  { %v797_v26 = vpop.permute.xlu1 %796 }
 0xb9b   :  { %1710 = vmatmul.msk.bf16.vlgmr.msrb.gmra.mxu1 %vm95_vm0, %v797_v26 }
 0xb9c   :  { %1153 = vmatpush.bf16.msrb.mxu1 %v2027_v1 }
 0xba0   :  { %1154 = vmatpush.bf16.msrb.mxu1 %v2039_v4 }
 0xbf6   :  { %v829_v28 = vpop.f32.mrf.mxu2  ;;  %v886_v29 = vpop.f32.mrf.mxu3 }
 0xbf7   :  { %v890_v30 = vadd.f32 %v886_v29, %v130_v27  ;;  %v2303_v29 = vld [vmem:[%s2535_s3] ss:$0 sm:$0xff] }
 0xbf9   :  { %1849 = vtanh.f32 %v890_v30  ;;  %v1714_v4 = vmul.f32 -1.442695, %v890_v30  ;;  %v133_v30 = vadd.f32 %v2303_v29, %v2138_v56 }
 0xbfe   :  { %v831_v39 = vpop.f32.mrf.mxu2  ;;  %v888_v38 = vpop.f32.mrf.mxu3 }
 0xbff   :  { %v1850_v31 = vpop.eup %1849 }
 0xc00   :  { %913 = vrot.lane.b32.xlu0 %v1850_v31, %s1959_s27 }
 0xc18   :  { %v810_v40 = vpop.f32.mrf.mxu1 }
 0xc19   :  { %v830_v41 = vadd.f32 %v829_v28, %v810_v40 }
 0xc1b   :  { %v833_v52 = vadd.f32 %v2147_v61, %v830_v41 }
 0xc1d   :  { %1851 = vtanh.f32 %v833_v52  ;;  %v1712_v53 = vmul.f32 -1.442695, %v833_v52 }
 0xc1e   :  { %1853 = vpow2.f32 %v1714_v4 }
 0xc1f   :  { %1855 = vpow2.f32 %v1712_v53 }
 0xc20   :  { %v812_v1 = vpop.f32.mrf.mxu1 }
 0xc23   :  { %v1852_v32 = vpop.eup %1851 }
 0xc24   :  { %856 = vrot.lane.b32.xlu2 %v1852_v32, %s1959_s27  ;;  %v1854_v9 = vpop.eup %1853 }
 0xc25   :  { %v894_v33 = vadd.f32 1.0, %v1854_v9  ;;  %v1856_v35 = vpop.eup %1855 }
 0xc26   :  { %v837_v37 = vadd.f32 1.0, %v1856_v35 }
 0xc27   :  { %1857 = vrcp.f32 %v894_v33  ;;  %v906_v49 = vand.u32 2147483648, %v894_v33  ;;  %vm900_vm8 = vweird.f32 %v894_v33  ;;  %v904_v55 = vand.u32 2147483647, %v894_v33 }
 0xc28   :  { %1859 = vrcp.f32 %v837_v37  ;;  %v849_v54 = vand.u32 2147483648, %v837_v37  ;;  %vm843_vm12 = vweird.f32 %v837_v37  ;;  %v847_v7 = vand.u32 2147483647, %v837_v37 }
 0xc29   :  { %v907_v62 = vor.u32 1.1754944e-38, %v906_v49  ;;  %vm905_vm10 = vcmp.eq.f32.partialorder %v904_v55, 8.507059e+37 }
 0xc2a   :  { %v850_v11 = vor.u32 1.1754944e-38, %v849_v54  ;;  %vm848_vm14 = vcmp.eq.f32.partialorder %v847_v7, 8.507059e+37 }
 0xc2d   :  { %v1858_v36 = vpop.eup %1857 }
 0xc2e   :  { %v896_v42 = vmul.f32 %v1858_v36, %v894_v33  ;;  %v1860_v45 = vpop.eup %1859  ;;  %vm901_vm7 = vweird.f32 %v1858_v36 }
 0xc2f   :  { %v839_v48 = vmul.f32 %v1860_v45, %v837_v37  ;;  %vm902_vm9 = vmor %vm900_vm8, %vm901_vm7  ;;  %vm844_vm11 = vweird.f32 %v1860_v45 }
 0xc30   :  { %v897_v43 = vsub.f32 1.0, %v896_v42  ;;  %vm845_vm13 = vmor %vm843_vm12, %vm844_vm11 }
 0xc31   :  { %v840_v60 = vsub.f32 1.0, %v839_v48 }
 0xc32   :  { %v898_v44 = vmul.f32 %v1858_v36, %v897_v43 }
 0xc33   :  { %v841_v5 = vmul.f32 %v1860_v45, %v840_v60 }
 0xc34   :  { %v899_v47 = vadd.f32 %v1858_v36, %v898_v44 }
 0xc35   :  { %v842_v6 = vadd.f32 %v1860_v45, %v841_v5 }
 0xc36   :  { %v903_v58 = vsel %vm902_vm9, %v1858_v36, %v899_v47 }
 0xc37   :  { %v908_v34 = vsel %vm905_vm10, %v907_v62, %v903_v58  ;;  %v846_v46 = vsel %vm845_vm13, %v1860_v45, %v842_v6 }
 0xc38   :  { %v851_v14 = vsel %vm848_vm14, %v850_v11, %v846_v46  ;;  %v911_v63 = vmul.f32 %v908_v34, %v2250_v17 }
 0xc39   :  { %v854_v19 = vmul.f32 %v851_v14, %v2255_v20 }
 0xc72   :  { %v914_v0 = vpop.permute.xlu0 %913 }
 0xc73   :  { %v916_v2 = vmul.f32 %v914_v0, %v908_v34 }
 0xc75   :  { %918 = vrot.lane.b32.xlu2 %v916_v2, %s1960_s30 }
 0xc7e   :  { %v857_v12 = vpop.permute.xlu2 %856 }
 0xc7f   :  { %v859_v15 = vmul.f32 %v857_v12, %v851_v14 }
 0xc81   :  { %861 = vrot.lane.b32.xlu1 %v859_v15, %s1960_s30 }
 0xccf   :  { %v919_v16 = vpop.permute.xlu2 %918 }
 0xcd0   :  { %v2282_v50 = vadd.f32 %v919_v16, %v911_v63 }
 0xcd2   :  { %1861 = vtanh.f32 %v2282_v50 }
 0xcd8   :  { %v1862_v3 = vpop.eup %1861 }
 0xcd9   :  { %924 = vrot.lane.b32.xlu1 %v1862_v3, %s1959_s27 }
 0xcf3   :  { %v862_v21 = vpop.permute.xlu1 %861 }
 0xcf4   :  { %v2287_v22 = vadd.f32 %v862_v21, %v854_v19 }
 0xcf6   :  { %1863 = vtanh.f32 %v2287_v22 }
 0xcfc   :  { %v1864_v8 = vpop.eup %1863 }
 0xcfd   :  { %867 = vrot.lane.b32.xlu0 %v1864_v8, %s1959_s27 }
 0xd4b   :  { %v925_v23 = vpop.permute.xlu1 %924 }
 0xd4c   :  { %v927_v17 = vmul.f32 %v925_v23, %v908_v34 }
 0xd4e   :  { %v929_v24 = vpack.c.bf16 %v927_v17, %v927_v17 }
 0xd50   :  { %950 = vrot.lane.b32.xlu0 %v929_v24, %s1960_s30 }
 0xd6f   :  { %v868_v51 = vpop.permute.xlu0 %867 }
 0xd70   :  { %v2292_v13 = vmul.f32 %v868_v51, %v851_v14 }
 0xd72   :  { %v928_v26 = vpack.c.bf16 %v2292_v13, %v2292_v13 }
 0xd74   :  { %931 = vrot.lane.b32.xlu2 %v928_v26, %s1960_s30 }
 0xdc2   :  { %v951_v20 = vpop.permute.xlu0 %950 }
 0xdc3   :  { %1716 = vmatmul.msk.bf16.vlgmr.msra.gmra.mxu1 %vm95_vm0, %v951_v20  ;;  %1718 = vmatmul.msk.bf16.vlgmr.msra.gmra.mxu2 %vm95_vm0, %v951_v20 }
 0xdce   :  { %v932_v27 = vpop.permute.xlu2 %931 }
 0xdcf   :  { %1715 = vmatmul.msk.bf16.vlgmr.msrb.gmra.mxu0 %vm95_vm0, %v932_v27 }
 0xe40   :  { %v964_v28 = vpop.f32.mrf.mxu1 }
 0xe46   :  { %v1021_v39 = vpop.f32.mrf.mxu2 }
 0xe47   :  { %v1025_v38 = vadd.f32 %v1021_v39, %v133_v30  ;;  %v135_v30 = vadd.f32 %v2303_v29, %v2140_v57 }
 0xe48   :  { %v966_v31 = vpop.f32.mrf.mxu1 }
 0xe49   :  { %1865 = vtanh.f32 %v1025_v38  ;;  %v1719_v53 = vmul.f32 -1.442695, %v1025_v38 }
 0xe4c   :  { %v945_v40 = vpop.f32.mrf.mxu0 }
 0xe4d   :  { %v965_v41 = vadd.f32 %v964_v28, %v945_v40 }
 0xe4e   :  { %v1023_v52 = vpop.f32.mrf.mxu2 }
 0xe4f   :  { %v1866_v1 = vpop.eup %1865  ;;  %v968_v32 = vadd.f32 %v2147_v61, %v965_v41 }
 0xe50   :  { %1048 = vrot.lane.b32.xlu2 %v1866_v1, %s1959_s27 }
 0xe51   :  { %1867 = vtanh.f32 %v968_v32  ;;  %v1717_v42 = vmul.f32 -1.442695, %v968_v32 }
 0xe52   :  { %1869 = vpow2.f32 %v1719_v53 }
 0xe54   :  { %v947_v4 = vpop.f32.mrf.mxu0 }
 0xe55   :  { %v2337_v4 = vld [vmem:[%s2535_s3 + $0x1] ss:$0 sm:$0xff] }
 0xe57   :  { %v1868_v9 = vpop.eup %1867 }
 0xe58   :  { %991 = vrot.lane.b32.xlu1 %v1868_v9, %s1959_s27  ;;  %v1870_v56 = vpop.eup %1869 }
 0xe59   :  { %v1029_v33 = vadd.f32 1.0, %v1870_v56 }
 0xe5b   :  { %1871 = vrcp.f32 %v1029_v33  ;;  %v1041_v61 = vand.u32 2147483648, %v1029_v33  ;;  %vm1035_vm1 = vweird.f32 %v1029_v33  ;;  %v1039_v45 = vand.u32 2147483647, %v1029_v33 }
 0xe5c   :  { %1873 = vpow2.f32 %v1717_v42 }
 0xe5d   :  { %v1042_v49 = vor.u32 1.1754944e-38, %v1041_v61  ;;  %vm1040_vm3 = vcmp.eq.f32.partialorder %v1039_v45, 8.507059e+37 }
 0xe61   :  { %v1872_v35 = vpop.eup %1871 }
 0xe62   :  { %v1031_v36 = vmul.f32 %v1872_v35, %v1029_v33  ;;  %vm1036_vm15 = vweird.f32 %v1872_v35  ;;  %v1874_v47 = vpop.eup %1873 }
 0xe63   :  { %vm1037_vm2 = vmor %vm1035_vm1, %vm1036_vm15  ;;  %v972_v55 = vadd.f32 1.0, %v1874_v47 }
 0xe64   :  { %v1032_v37 = vsub.f32 1.0, %v1031_v36 }
 0xe65   :  { %1875 = vrcp.f32 %v972_v55  ;;  %v984_v54 = vand.u32 2147483648, %v972_v55  ;;  %vm978_vm5 = vweird.f32 %v972_v55  ;;  %v982_v7 = vand.u32 2147483647, %v972_v55 }
 0xe66   :  { %v1033_v43 = vmul.f32 %v1872_v35, %v1032_v37 }
 0xe67   :  { %v985_v11 = vor.u32 1.1754944e-38, %v984_v54  ;;  %vm983_vm7 = vcmp.eq.f32.partialorder %v982_v7, 8.507059e+37 }
 0xe68   :  { %v1034_v44 = vadd.f32 %v1872_v35, %v1033_v43 }
 0xe6a   :  { %v1038_v48 = vsel %vm1037_vm2, %v1872_v35, %v1034_v44 }
 0xe6b   :  { %v1043_v60 = vsel %vm1040_vm3, %v1042_v49, %v1038_v48  ;;  %v1876_v0 = vpop.eup %1875 }
 0xe6c   :  { %v974_v34 = vmul.f32 %v1876_v0, %v972_v55  ;;  %vm979_vm4 = vweird.f32 %v1876_v0  ;;  %v1046_v63 = vmul.f32 %v1043_v60, %v2282_v50 }
 0xe6d   :  { %vm980_vm6 = vmor %vm978_vm5, %vm979_vm4  ;;  %vm1392_vm5 = vcmask 523264  }
 0xe6e   :  { %v975_v2 = vsub.f32 1.0, %v974_v34 }
 0xe70   :  { %v976_v5 = vmul.f32 %v1876_v0, %v975_v2 }
 0xe72   :  { %v977_v6 = vadd.f32 %v1876_v0, %v976_v5 }
 0xe74   :  { %v981_v46 = vsel %vm980_vm6, %v1876_v0, %v977_v6 }
 0xe75   :  { %v986_v14 = vsel %vm983_vm7, %v985_v11, %v981_v46 }
 0xe76   :  { %v989_v21 = vmul.f32 %v986_v14, %v2287_v22 }
 0xeaa   :  { %v1049_v58 = vpop.permute.xlu2 %1048 }
 0xeab   :  { %v1051_v62 = vmul.f32 %v1049_v58, %v1043_v60 }
 0xead   :  { %1053 = vrot.lane.b32.xlu1 %v1051_v62, %s1960_s30 }
 0xeca   :  { %v992_v12 = vpop.permute.xlu1 %991 }
 0xecb   :  { %v994_v15 = vmul.f32 %v992_v12, %v986_v14 }
 0xecd   :  { %996 = vrot.lane.b32.xlu0 %v994_v15, %s1960_s30 }
 0xf1f   :  { %v1054_v16 = vpop.permute.xlu1 %1053 }
 0xf20   :  { %v2313_v3 = vadd.f32 %v1054_v16, %v1046_v63 }
 0xf22   :  { %1877 = vtanh.f32 %v2313_v3 }
 0xf28   :  { %v1878_v19 = vpop.eup %1877 }
 0xf29   :  { %1059 = vrot.lane.b32.xlu0 %v1878_v19, %s1959_s27 }
 0xf3f   :  { %v997_v8 = vpop.permute.xlu0 %996 }
 0xf40   :  { %v2318_v23 = vadd.f32 %v997_v8, %v989_v21 }
 0xf42   :  { %1879 = vtanh.f32 %v2318_v23 }
 0xf48   :  { %v1880_v17 = vpop.eup %1879 }
 0xf49   :  { %1002 = vrot.lane.b32.xlu2 %v1880_v17, %s1959_s27 }
 0xf9b   :  { %v1060_v24 = vpop.permute.xlu0 %1059 }
 0xf9c   :  { %v1062_v50 = vmul.f32 %v1060_v24, %v1043_v60 }
 0xf9e   :  { %v1064_v51 = vpack.c.bf16 %v1062_v50, %v1062_v50 }
 0xfa0   :  { %1085 = vrot.lane.b32.xlu2 %v1064_v51, %s1960_s30 }
 0xfa3   :  { %v1003_v26 = vpop.permute.xlu2 %1002 }
 0xfa4   :  { %v2323_v20 = vmul.f32 %v1003_v26, %v986_v14 }
 0xfa6   :  { %v1063_v27 = vpack.c.bf16 %v2323_v20, %v2323_v20 }
 0xfa8   :  { %1066 = vrot.lane.b32.xlu1 %v1063_v27, %s1960_s30 }
 0xffa   :  { %v1086_v22 = vpop.permute.xlu2 %1085 }
 0xffb   :  { %1721 = vmatmul.msk.bf16.vlgmr.msra.gmra.mxu0 %vm95_vm0, %v1086_v22  ;;  %1723 = vmatmul.msk.bf16.vlgmr.msrb.gmra.mxu1 %vm95_vm0, %v1086_v22 }
0x101a   :  { %v1067_v28 = vpop.permute.xlu1 %1066 }
0x101b   :  { %1720 = vmatmul.msk.bf16.vlgmr.msra.gmra.mxu3 %vm95_vm0, %v1067_v28 }
0x1078   :  { %v1099_v39 = vpop.f32.mrf.mxu0  ;;  %v1156_v38 = vpop.f32.mrf.mxu1 }
0x1079   :  { %v1160_v31 = vadd.f32 %v1156_v38, %v135_v30 }
0x107b   :  { %1881 = vtanh.f32 %v1160_v31  ;;  %v1724_v53 = vmul.f32 -1.442695, %v1160_v31 }
0x1080   :  { %v1101_v40 = vpop.f32.mrf.mxu0  ;;  %v1158_v41 = vpop.f32.mrf.mxu1 }
0x1081   :  { %v1882_v52 = vpop.eup %1881 }
0x1082   :  { %1183 = vrot.lane.b32.xlu1 %v1882_v52, %s1959_s27  ;;  %v1763_v52 = vld [vmem:[%s2536_s4 + $0x18] sm:$0xff] }
0x109e   :  { %v1080_v1 = vpop.f32.mrf.mxu3 }
0x109f   :  { %v1100_v32 = vadd.f32 %v1099_v39, %v1080_v1  ;;  %v1361_v1 = vsel %vm95_vm0, %v1763_v52, 0 }
0x10a0   :  { %1367 = vmatpush.bf16.xpose.msrb.mxu0 %v1361_v1 }
0x10a1   :  { %v1103_v9 = vadd.f32 %v2337_v4, %v1100_v32 }
0x10a3   :  { %1883 = vtanh.f32 %v1103_v9  ;;  %v1722_v61 = vmul.f32 -1.442695, %v1103_v9  ;;  %v1762_v9 = vld [vmem:[%s2536_s4 + $0x10] sm:$0xff] }
0x10a4   :  { %1885 = vpow2.f32 %v1724_v53 }
0x10a6   :  { %v1082_v57 = vpop.f32.mrf.mxu3 }
0x10a9   :  { %v1884_v29 = vpop.eup %1883 }
0x10aa   :  { %1126 = vrot.lane.b32.xlu0 %v1884_v29, %s1959_s27  ;;  %v1886_v56 = vpop.eup %1885  ;;  %v1358_v29 = vsel %vm95_vm0, %v1762_v9, 0 }
0x10ab   :  { %v1164_v33 = vadd.f32 1.0, %v1886_v56  ;;  %1368 = vmatpush.bf16.xpose.msrb.mxu0 %v1358_v29 }
0x10ad   :  { %1887 = vrcp.f32 %v1164_v33  ;;  %v1176_v44 = vand.u32 2147483648, %v1164_v33  ;;  %vm1170_vm9 = vweird.f32 %v1164_v33  ;;  %v1174_v45 = vand.u32 2147483647, %v1164_v33 }
0x10ae   :  { %1889 = vpow2.f32 %v1722_v61 }
0x10af   :  { %v1177_v48 = vor.u32 1.1754944e-38, %v1176_v44  ;;  %vm1175_vm11 = vcmp.eq.f32.partialorder %v1174_v45, 8.507059e+37 }
0x10b3   :  { %v1888_v35 = vpop.eup %1887 }
0x10b4   :  { %v1166_v36 = vmul.f32 %v1888_v35, %v1164_v33  ;;  %vm1171_vm8 = vweird.f32 %v1888_v35  ;;  %v1890_v60 = vpop.eup %1889  ;;  %v1761_v33 = vld [vmem:[%s2536_s4 + $0x8] sm:$0xff] }
0x10b5   :  { %vm1172_vm10 = vmor %vm1170_vm9, %vm1171_vm8  ;;  %v1107_v62 = vadd.f32 1.0, %v1890_v60 }
0x10b6   :  { %v1167_v37 = vsub.f32 1.0, %v1166_v36 }
0x10b7   :  { %1891 = vrcp.f32 %v1107_v62  ;;  %v1119_v54 = vand.u32 2147483648, %v1107_v62  ;;  %vm1113_vm13 = vweird.f32 %v1107_v62  ;;  %v1117_v7 = vand.u32 2147483647, %v1107_v62 }
0x10b8   :  { %v1168_v42 = vmul.f32 %v1888_v35, %v1167_v37 }
0x10b9   :  { %v1120_v11 = vor.u32 1.1754944e-38, %v1119_v54  ;;  %vm1118_vm15 = vcmp.eq.f32.partialorder %v1117_v7, 8.507059e+37 }
0x10ba   :  { %v1169_v43 = vadd.f32 %v1888_v35, %v1168_v42 }
0x10bc   :  { %v1173_v47 = vsel %vm1172_vm10, %v1888_v35, %v1169_v43  ;;  %v1355_v35 = vsel %vm95_vm0, %v1761_v33, 0 }
0x10bd   :  { %v1178_v55 = vsel %vm1175_vm11, %v1177_v48, %v1173_v47  ;;  %v1892_v0 = vpop.eup %1891  ;;  %1369 = vmatpush.bf16.xpose.msrb.mxu0 %v1355_v35 }
0x10be   :  { %v1109_v34 = vmul.f32 %v1892_v0, %v1107_v62  ;;  %vm1114_vm12 = vweird.f32 %v1892_v0  ;;  %v1181_v63 = vmul.f32 %v1178_v55, %v2313_v3 }
0x10bf   :  { %vm1115_vm14 = vmor %vm1113_vm13, %vm1114_vm12 }
0x10c0   :  { %v1110_v2 = vsub.f32 1.0, %v1109_v34 }
0x10c2   :  { %v1111_v5 = vmul.f32 %v1892_v0, %v1110_v2 }
0x10c4   :  { %v1112_v6 = vadd.f32 %v1892_v0, %v1111_v5 }
0x10c6   :  { %v1116_v46 = vsel %vm1115_vm14, %v1892_v0, %v1112_v6 }
0x10c7   :  { %v1121_v14 = vsel %vm1118_vm15, %v1120_v11, %v1116_v46 }
0x10c8   :  { %v1124_v8 = vmul.f32 %v1121_v14, %v2318_v23 }
0x10f4   :  { %v1184_v49 = vpop.permute.xlu1 %1183 }
0x10f5   :  { %v1186_v58 = vmul.f32 %v1184_v49, %v1178_v55 }
0x10f7   :  { %1188 = vrot.lane.b32.xlu0 %v1186_v58, %s1960_s30 }
0x111c   :  { %v1127_v12 = vpop.permute.xlu0 %1126 }
0x111d   :  { %v1129_v15 = vmul.f32 %v1127_v12, %v1121_v14 }
0x111f   :  { %1131 = vrot.lane.b32.xlu2 %v1129_v15, %s1960_s30  ;;  %v1401_v15 = vlaneseq }
0x1169   :  { %v1189_v16 = vpop.permute.xlu0 %1188 }
0x116a   :  { %v2344_v19 = vadd.f32 %v1189_v16, %v1181_v63  ;;  %v2406_v63 = vand.u32 127, %v1401_v15 }
0x116c   :  { %1893 = vtanh.f32 %v2344_v19  ;;  %vm1403_vm6 = vcmp.eq.s32.totalorder %v2406_v63, 0 }
0x1172   :  { %v1894_v21 = vpop.eup %1893 }
0x1173   :  { %1194 = vrot.lane.b32.xlu2 %v1894_v21, %s1959_s27 }
0x1179   :  { %v1132_v17 = vpop.permute.xlu2 %1131 }
0x117a   :  { %v2349_v24 = vadd.f32 %v1132_v17, %v1124_v8 }
0x117c   :  { %1895 = vtanh.f32 %v2349_v24 }
0x1182   :  { %v1896_v50 = vpop.eup %1895 }
0x1183   :  { %1137 = vrot.lane.b32.xlu1 %v1896_v50, %s1959_s27 }
0x11cd   :  { %v1195_v51 = vpop.permute.xlu2 %1194 }
0x11ce   :  { %v2353_v3 = vmul.f32 %v1195_v51, %v1178_v55 }
0x11d0   :  { %v1199_v26 = vpack.c.bf16 %v2353_v3, %v2353_v3 }
0x11d2   :  { %1220 = vrot.lane.b32.xlu1 %v1199_v26, %s1960_s30 }
0x11da   :  { %332 = vrot.lane.b32.xlu1 %v2163_v59, %s1960_s30 }
0x11e2   :  { %602 = vrot.lane.b32.xlu1 %v2228_v18, %s1960_s30 }
0x11ea   :  { %1007 = vrot.lane.b32.xlu1 %v2323_v20, %s1960_s30 }
0x11f5   :  { %v1138_v23 = vpop.permute.xlu1 %1137 }
0x11f6   :  { %v1140_v27 = vmul.f32 %v1138_v23, %v1121_v14 }
0x11f8   :  { %v1198_v22 = vpack.c.bf16 %v1140_v27, %v1140_v27 }
0x11fa   :  { %1201 = vrot.lane.b32.xlu0 %v1198_v22, %s1960_s30 }
0x1244   :  { %v1221_v28 = vpop.permute.xlu1 %1220 }
0x1245   :  { %1726 = vmatmul.msk.bf16.vlgmr.msrb.gmra.mxu3 %vm95_vm0, %v1221_v28 }
0x124c   :  { %v333_v30 = vpop.permute.xlu1 %332 }
0x124d   :  { %335 = vst.msk [vmem:[#allocation3] sm:$0xff] %vm95_vm0, %v333_v30 }
0x1254   :  { %v603_v39 = vpop.permute.xlu1 %602  ;;  %v1299_v0 = vld [vmem:[#allocation3] sm:$0xff] }
0x1255   :  { %605 = vst.msk [vmem:[#allocation3 + $0x10] sm:$0xff] %vm95_vm0, %v603_v39 }
0x125c   :  { %v1008_v59 = vpop.permute.xlu1 %1007  ;;  %v1301_v54 = vld [vmem:[#allocation3 + $0x10] sm:$0xff] }
0x125d   :  { %1010 = vst.msk [vmem:[#allocation3 + $0x28] sm:$0xff] %vm95_vm0, %v1008_v59 }
0x1264   :  { %v1304_v39 = vld [vmem:[#allocation3 + $0x28] sm:$0xff] }
0x126c   :  { %v1202_v18 = vpop.permute.xlu0 %1201 }
0x126d   :  { %1725 = vmatmul.msk.bf16.vlgmr.msrb.gmra.mxu2 %vm95_vm0, %v1202_v18 }
0x12c8   :  { %v1234_v20 = vpop.f32.mrf.mxu3 }
0x12d0   :  { %v1236_v38 = vpop.f32.mrf.mxu3 }
0x12f0   :  { %v1215_v31 = vpop.f32.mrf.mxu2 }
0x12f1   :  { %v1235_v40 = vadd.f32 %v1234_v20, %v1215_v31 }
0x12f3   :  { %v1238_v41 = vadd.f32 %v2337_v4, %v1235_v40 }
0x12f5   :  { %1897 = vtanh.f32 %v1238_v41  ;;  %v1727_v4 = vmul.f32 -1.442695, %v1238_v41 }
0x12f7   :  { %1899 = vpow2.f32 %v1727_v4 }
0x12f8   :  { %v1217_v32 = vpop.f32.mrf.mxu2 }
0x12fb   :  { %v1898_v57 = vpop.eup %1897 }
0x12fc   :  { %1261 = vrot.lane.b32.xlu2 %v1898_v57, %s1959_s27 }
0x12fd   :  { %v1900_v53 = vpop.eup %1899 }
0x12fe   :  { %v1242_v56 = vadd.f32 1.0, %v1900_v53 }
0x1300   :  { %1901 = vrcp.f32 %v1242_v56  ;;  %v1254_v61 = vand.u32 2147483648, %v1242_v56  ;;  %vm1248_vm2 = vweird.f32 %v1242_v56  ;;  %v1252_v45 = vand.u32 2147483647, %v1242_v56 }
0x1302   :  { %v1255_v48 = vor.u32 1.1754944e-38, %v1254_v61  ;;  %vm1253_vm4 = vcmp.eq.f32.partialorder %v1252_v45, 8.507059e+37 }
0x1304   :  { %467 = vrot.lane.b32.xlu2 %v2196_v10, %s1960_s30  ;;  %v1760_v10 = vld [vmem:[%s2536_s4] sm:$0xff]  ;;  %s1961_s4 = smov [#allocation4]  }
0x1305   :  { %s1589_s19 = sshll.u32 %s1961_s4, 4  ;;  %s1590_s19 = int_to_ptr.vmem [resolvable:$true] %s1589_s19 }
0x1306   :  { %v1902_v36 = vpop.eup %1901 }
0x1307   :  { %v1244_v37 = vmul.f32 %v1902_v36, %v1242_v56  ;;  %vm1249_vm1 = vweird.f32 %v1902_v36 }
0x1308   :  { %vm1250_vm3 = vmor %vm1248_vm2, %vm1249_vm1 }
0x1309   :  { %v1245_v42 = vsub.f32 1.0, %v1244_v37 }
0x130b   :  { %v1246_v43 = vmul.f32 %v1902_v36, %v1245_v42 }
0x130c   :  { %737 = vrot.lane.b32.xlu2 %v2260_v25, %s1960_s30  ;;  %v1352_v25 = vsel %vm95_vm0, %v1760_v10, 0 }
0x130d   :  { %1370 = vmatpush.bf16.xpose.msrb.mxu0 %v1352_v25  ;;  %v1247_v44 = vadd.f32 %v1902_v36, %v1246_v43 }
0x130f   :  { %v1251_v47 = vsel %vm1250_vm3, %v1902_v36, %v1247_v44 }
0x1310   :  { %v1256_v55 = vsel %vm1253_vm4, %v1255_v48, %v1251_v47 }
0x1311   :  { %v1259_v46 = vmul.f32 %v1256_v55, %v2349_v24 }
0x1314   :  { %1142 = vrot.lane.b32.xlu2 %v1140_v27, %s1960_s30 }
0x1356   :  { %v1262_v49 = vpop.permute.xlu2 %1261 }
0x1357   :  { %v1264_v58 = vmul.f32 %v1262_v49, %v1256_v55 }
0x1359   :  { %1266 = vrot.lane.b32.xlu0 %v1264_v58, %s1960_s30 }
0x135e   :  { %v468_v60 = vpop.permute.xlu2 %467 }
0x135f   :  { %470 = vst.msk [vmem:[#allocation3 + $0x8] sm:$0xff] %vm95_vm0, %v468_v60 }
0x1366   :  { %v738_v62 = vpop.permute.xlu2 %737  ;;  %v1300_v34 = vld [vmem:[#allocation3 + $0x8] sm:$0xff] }
0x1367   :  { %740 = vst.msk [vmem:[#allocation3 + $0x18] sm:$0xff] %vm95_vm0, %v738_v62  ;;  %v1307_v2 = vpack.c.bf16 %v1300_v34, %v1299_v0 }
0x1369   :  { %1744 = vmatmul.msk.bf16.vlgmr.msrb.gmra.mxu0 %vm95_vm0, %v1307_v2 }
0x136e   :  { %v1143_v5 = vpop.permute.xlu2 %1142  ;;  %v1302_v6 = vld [vmem:[#allocation3 + $0x18] sm:$0xff] }
0x136f   :  { %1145 = vst.msk [vmem:[#allocation3 + $0x30] sm:$0xff] %vm95_vm0, %v1143_v5  ;;  %v1308_v7 = vpack.c.bf16 %v1302_v6, %v1301_v54 }
0x1376   :  { %v1305_v31 = vld [vmem:[#allocation3 + $0x30] sm:$0xff] }
0x1379   :  { %1745 = vmatmul.msk.bf16.gmra.mxu0 %vm95_vm0, %v1308_v7 }
0x13cb   :  { %v1267_v11 = vpop.permute.xlu0 %1266 }
0x13cc   :  { %v2400_v12 = vadd.f32 %v1267_v11, %v1259_v46 }
0x13ce   :  { %1903 = vtanh.f32 %v2400_v12 }
0x13d4   :  { %v1904_v14 = vpop.eup %1903 }
0x13d5   :  { %1272 = vrot.lane.b32.xlu0 %v1904_v14, %s1959_s27 }
0x13dd   :  { %872 = vrot.lane.b32.xlu0 %v2292_v13, %s1960_s30 }
0x13e6   :  { %v1372_v16 = vpop.f32.mrf.mxu0 }
0x13e7   :  { %1393 = vst.msk [vmem:[%s2539_s7] sm:$0xff] %vm1392_vm5, %v1372_v16  ;;  %v1404_v21 = vsel %vm1403_vm6, -3.4028235e+38, %v1372_v16 }
0x13e8   :  { %v1412_v8 = vsel %vm1392_vm5, %v1404_v21, -inf }
0x13e9   :  { %1413 = vmax.xlane.f32.xlu1 %v1412_v8 }
0x13ee   :  { %v1374_v17 = vpop.f32.mrf.mxu0 }
0x13ef   :  { %1394 = vst.msk [vmem:[%s2539_s7 + $0x8] sm:$0xff] %vm1392_vm5, %v1374_v17  ;;  %v1405_v13 = vsel %vm1403_vm6, -3.4028235e+38, %v1374_v17 }
0x13f0   :  { %v1415_v24 = vsel %vm1392_vm5, %v1405_v13, -inf }
0x13f1   :  { %1416 = vmax.xlane.f32.xlu2 %v1415_v24 }
0x13f6   :  { %v1377_v50 = vpop.f32.mrf.mxu0 }
0x13f7   :  { %1395 = vst.msk [vmem:[%s2539_s7 + $0x10] sm:$0xff] %vm1392_vm5, %v1377_v50  ;;  %v1406_v18 = vsel %vm1403_vm6, -3.4028235e+38, %v1377_v50 }
0x13f8   :  { %v1418_v20 = vsel %vm1392_vm5, %v1406_v18, -inf }
0x13fe   :  { %v1379_v51 = vpop.f32.mrf.mxu0 }
0x13ff   :  { %1396 = vst.msk [vmem:[%s2539_s7 + $0x18] sm:$0xff] %vm1392_vm5, %v1379_v51  ;;  %v1407_v26 = vsel %vm1403_vm6, -3.4028235e+38, %v1379_v51 }
0x1400   :  { %v1421_v23 = vsel %vm1392_vm5, %v1407_v26, -inf }
0x1401   :  { %1422 = vmax.xlane.f32.xlu2 %v1421_v23 }
0x1447   :  { %v1273_v27 = vpop.permute.xlu0 %1272 }
0x1448   :  { %v1275_v22 = vmul.f32 %v1273_v27, %v1256_v55 }
0x144a   :  { %1277 = vrot.lane.b32.xlu0 %v1275_v22, %s1960_s30 }
0x144f   :  { %v873_v28 = vpop.permute.xlu0 %872 }
0x1450   :  { %875 = vst.msk [vmem:[#allocation3 + $0x20] sm:$0xff] %vm95_vm0, %v873_v28 }
0x1457   :  { %v1303_v30 = vld [vmem:[#allocation3 + $0x20] sm:$0xff] }
0x1458   :  { %v1309_v59 = vpack.c.bf16 %v1304_v39, %v1303_v30 }
0x145a   :  { %1746 = vmatmul.msk.bf16.gmra.mxu0 %vm95_vm0, %v1309_v59 }
0x145c   :  { %v1414_v1 = vpop.xlane.xlu1 %1413 }
0x145d   :  { %vm1436_vm7 = vcmp.eq.f32.partialorder %v1404_v21, %v1414_v1 }
0x145e   :  { %v1444_v29 = vsel %vm1436_vm7, %v2406_v63, 64  ;;  %vm1572_vm7 = vcmask 7168  }
0x145f   :  { %v1452_v33 = vsel %vm1392_vm5, %v1444_v29, 2147483647 }
0x1460   :  { %v1454_v10 = vshra.s32 %v1452_v33, 16  ;;  %v1453_v24 = vand.u32 65535, %v1452_v33 }
0x1462   :  { %v1456_v25 = vcvt.s32.f32 %v1454_v10  ;;  %v1455_v50 = vcvt.s32.f32 %v1453_v24 }
0x1464   :  { %v1417_v32 = vpop.xlane.xlu2 %1416 }
0x1465   :  { %vm1437_vm9 = vcmp.eq.f32.partialorder %v1405_v13, %v1417_v32 }
0x1466   :  { %v1445_v44 = vsel %vm1437_vm9, %v2406_v63, 64 }
0x1467   :  { %v1467_v48 = vsel %vm1392_vm5, %v1445_v44, 2147483647 }
0x1468   :  { %v1469_v55 = vshra.s32 %v1467_v48, 16  ;;  %v1468_v30 = vand.u32 65535, %v1467_v48 }
0x146a   :  { %v1471_v34 = vcvt.s32.f32 %v1469_v55 }
0x1474   :  { %1419 = vmax.xlane.f32.xlu0 %v1418_v20  ;;  %v1423_v53 = vpop.xlane.xlu2 %1422 }
0x1475   :  { %vm1439_vm8 = vcmp.eq.f32.partialorder %v1407_v26, %v1423_v53 }
0x1476   :  { %v1447_v36 = vsel %vm1439_vm8, %v2406_v63, 64 }
0x1477   :  { %v1497_v37 = vsel %vm1392_vm5, %v1447_v36, 2147483647 }
0x1478   :  { %v1499_v42 = vshra.s32 %v1497_v37, 16  ;;  %v1498_v23 = vand.u32 65535, %v1497_v37 }
0x147a   :  { %v1501_v43 = vcvt.s32.f32 %v1499_v42  ;;  %v1500_v27 = vcvt.s32.f32 %v1498_v23 }
0x14bc   :  { %v1278_v38 = vpop.permute.xlu0 %1277 }
0x14bd   :  { %1280 = vst.msk [vmem:[#allocation3 + $0x38] sm:$0xff] %vm95_vm0, %v1278_v38 }
0x14be   :  { %1292 = vst.msk [vmem:[#allocation4 + $0x8] sm:$0xff] %vm95_vm0, %v1278_v38 }
0x14c4   :  { %v1306_v40 = vld [vmem:[#allocation3 + $0x38] sm:$0xff] }
0x14c5   :  { %v1310_v41 = vpack.c.bf16 %v1306_v40, %v1305_v31 }
0x14c7   :  { %1747 = vmatmul.msk.bf16.gmra.mxu0 %vm95_vm0, %v1310_v41 }
0x14d7   :  { %v1382_v52 = vpop.f32.mrf.mxu0 }
0x14d8   :  { %1397 = vst.msk [vmem:[%s2539_s7 + $0x20] sm:$0xff] %vm1392_vm5, %v1382_v52  ;;  %v1408_v9 = vsel %vm1403_vm6, -3.4028235e+38, %v1382_v52 }
0x14d9   :  { %v1424_v57 = vsel %vm1392_vm5, %v1408_v9, -inf }
0x14da   :  { %1425 = vmax.xlane.f32.xlu1 %v1424_v57 }
0x14df   :  { %v1384_v4 = vpop.f32.mrf.mxu0 }
0x14e0   :  { %1398 = vst.msk [vmem:[%s2539_s7 + $0x28] sm:$0xff] %vm1392_vm5, %v1384_v4  ;;  %v1409_v56 = vsel %vm1403_vm6, -3.4028235e+38, %v1384_v4 }
0x14e1   :  { %v1427_v35 = vsel %vm1392_vm5, %v1409_v56, -inf }
0x14e2   :  { %1428 = vmax.xlane.f32.xlu2 %v1427_v35 }
0x14e7   :  { %v1420_v45 = vpop.xlane.xlu0 %1419 }
0x14e8   :  { %vm1438_vm10 = vcmp.eq.f32.partialorder %v1406_v18, %v1420_v45  ;;  %v1470_v18 = vcvt.s32.f32 %v1468_v30 }
0x14e9   :  { %v1446_v58 = vsel %vm1438_vm10, %v2406_v63, 64 }
0x14ea   :  { %1457 = vmin.xlane.f32.xlu2 %v1456_v25  ;;  %v1482_v2 = vsel %vm1392_vm5, %v1446_v58, 2147483647 }
0x14eb   :  { %v1484_v7 = vshra.s32 %v1482_v2, 16  ;;  %v1483_v31 = vand.u32 65535, %v1482_v2 }
0x14ed   :  { %v1486_v14 = vcvt.s32.f32 %v1484_v7 }
0x14f2   :  { %1502 = vmin.xlane.f32.xlu2 %v1501_v43 }
0x1544   :  { %v1387_v61 = vpop.f32.mrf.mxu0 }
0x1545   :  { %1399 = vst.msk [vmem:[%s2539_s7 + $0x30] sm:$0xff] %vm1392_vm5, %v1387_v61  ;;  %v1410_v47 = vsel %vm1403_vm6, -3.4028235e+38, %v1387_v61 }
0x1546   :  { %v1430_v49 = vsel %vm1392_vm5, %v1410_v47, -inf }
0x1547   :  { %1431 = vmax.xlane.f32.xlu0 %v1430_v49 }
0x154c   :  { %v1389_v60 = vpop.f32.mrf.mxu0 }
0x154d   :  { %1400 = vst.msk [vmem:[%s2539_s7 + $0x38] sm:$0xff] %vm1392_vm5, %v1389_v60  ;;  %v1411_v62 = vsel %vm1403_vm6, -3.4028235e+38, %v1389_v60  ;;  %v1426_v0 = vpop.xlane.xlu1 %1425 }
0x154e   :  { %vm1440_vm11 = vcmp.eq.f32.partialorder %v1408_v9, %v1426_v0  ;;  %v1433_v5 = vsel %vm1392_vm5, %v1411_v62, -inf  ;;  %v1485_v9 = vcvt.s32.f32 %v1483_v31 }
0x154f   :  { %v1448_v6 = vsel %vm1440_vm11, %v2406_v63, 64  ;;  %1472 = vmin.xlane.f32.xlu0 %v1471_v34  ;;  %1434 = vmax.xlane.f32.xlu1 %v1433_v5 }
0x1550   :  { %v1512_v54 = vsel %vm1392_vm5, %v1448_v6, 2147483647 }
0x1551   :  { %v1514_v46 = vshra.s32 %v1512_v54, 16  ;;  %v1513_v38 = vand.u32 65535, %v1512_v54 }
0x1553   :  { %v1516_v15 = vcvt.s32.f32 %v1514_v46  ;;  %v1515_v32 = vcvt.s32.f32 %v1513_v38 }
0x1555   :  { %v1429_v11 = vpop.xlane.xlu2 %1428 }
0x1556   :  { %vm1441_vm12 = vcmp.eq.f32.partialorder %v1409_v56, %v1429_v11 }
0x1557   :  { %v1449_v16 = vsel %vm1441_vm12, %v2406_v63, 64  ;;  %1487 = vmin.xlane.f32.xlu1 %v1486_v14  ;;  %1517 = vmin.xlane.f32.xlu0 %v1516_v15 }
0x1558   :  { %v1527_v21 = vsel %vm1392_vm5, %v1449_v16, 2147483647 }
0x1559   :  { %v1529_v8 = vshra.s32 %v1527_v21, 16 }
0x155b   :  { %v1531_v17 = vcvt.s32.f32 %v1529_v8 }
0x155d   :  { %v1458_v13 = vpop.xlane.xlu2 %1457 }
0x155e   :  { %vm1459_vm13 = vcmp.eq.f32.partialorder %v1456_v25, %v1458_v13  ;;  %v1464_v25 = vcvt.f32.s32 %v1458_v13 }
0x155f   :  { %1532 = vmin.xlane.f32.xlu1 %v1531_v17  ;;  %v1460_v51 = vsel %vm1459_vm13, %v1455_v50, inf }
0x1565   :  { %v1503_v26 = vpop.xlane.xlu2 %1502 }
0x1566   :  { %vm1504_vm14 = vcmp.eq.f32.partialorder %v1501_v43, %v1503_v26  ;;  %v1465_v43 = vshll.u32 %v1464_v25, 16 }
0x1567   :  { %1461 = vmin.xlane.f32.xlu1 %v1460_v51  ;;  %v1505_v22 = vsel %vm1504_vm14, %v1500_v27, inf }
0x156f   :  { %1506 = vmin.xlane.f32.xlu1 %v1505_v22 }
0x15ba   :  { %v1432_v28 = vpop.xlane.xlu0 %1431 }
0x15bb   :  { %vm1442_vm1 = vcmp.eq.f32.partialorder %v1410_v47, %v1432_v28  ;;  %v1509_v47 = vcvt.f32.s32 %v1503_v26 }
0x15bc   :  { %v1450_v40 = vsel %vm1442_vm1, %v2406_v63, 64 }
0x15bd   :  { %v1542_v57 = vsel %vm1392_vm5, %v1450_v40, 2147483647  ;;  %v1510_v49 = vshll.u32 %v1509_v47, 16 }
0x15be   :  { %v1544_v56 = vshra.s32 %v1542_v57, 16 }
0x15c0   :  { %v1546_v10 = vcvt.s32.f32 %v1544_v56 }
0x15c2   :  { %v1473_v39 = vpop.xlane.xlu0 %1472  ;;  %v1435_v59 = vpop.xlane.xlu1 %1434 }
0x15c3   :  { %vm1474_vm15 = vcmp.eq.f32.partialorder %v1471_v34, %v1473_v39  ;;  %vm1443_vm2 = vcmp.eq.f32.partialorder %v1411_v62, %v1435_v59  ;;  %v1479_v60 = vcvt.f32.s32 %v1473_v39 }
0x15c4   :  { %v1475_v20 = vsel %vm1474_vm15, %v1470_v18, inf  ;;  %v1451_v41 = vsel %vm1443_vm2, %v2406_v63, 64  ;;  %v1528_v63 = vand.u32 65535, %v1527_v21  ;;  %v1543_v21 = vand.u32 65535, %v1542_v57 }
0x15c5   :  { %1476 = vmin.xlane.f32.xlu2 %v1475_v20  ;;  %v1557_v29 = vsel %vm1392_vm5, %v1451_v41, 2147483647  ;;  %v1480_v0 = vshll.u32 %v1479_v60, 16 }
0x15c6   :  { %v1559_v33 = vshra.s32 %v1557_v29, 16  ;;  %v1530_v42 = vcvt.s32.f32 %v1528_v63  ;;  %v1558_v8 = vand.u32 65535, %v1557_v29  ;;  %v1545_v24 = vcvt.s32.f32 %v1543_v21 }
0x15c8   :  { %v1561_v36 = vcvt.s32.f32 %v1559_v33  ;;  %v1560_v50 = vcvt.s32.f32 %v1558_v8 }
0x15ca   :  { %v1518_v52 = vpop.xlane.xlu0 %1517  ;;  %v1488_v1 = vpop.xlane.xlu1 %1487 }
0x15cb   :  { %vm1519_vm3 = vcmp.eq.f32.partialorder %v1516_v15, %v1518_v52  ;;  %vm1489_vm4 = vcmp.eq.f32.partialorder %v1486_v14, %v1488_v1  ;;  %v1524_v5 = vcvt.f32.s32 %v1518_v52  ;;  %v1494_v6 = vcvt.f32.s32 %v1488_v1 }
0x15cc   :  { %v1520_v4 = vsel %vm1519_vm3, %v1515_v32, inf  ;;  %v1490_v53 = vsel %vm1489_vm4, %v1485_v9, inf }
0x15cd   :  { %1521 = vmin.xlane.f32.xlu2 %v1520_v4  ;;  %1491 = vmin.xlane.f32.xlu0 %v1490_v53  ;;  %v1525_v46 = vshll.u32 %v1524_v5, 16  ;;  %v1495_v11 = vshll.u32 %v1494_v6, 16 }
0x15d2   :  { %v1533_v35 = vpop.xlane.xlu1 %1532 }
0x15d3   :  { %vm1534_vm6 = vcmp.eq.f32.partialorder %v1531_v17, %v1533_v35  ;;  %v1539_v23 = vcvt.f32.s32 %v1533_v35 }
0x15d4   :  { %v1535_v61 = vsel %vm1534_vm6, %v1530_v42, inf }
0x15d5   :  { %1547 = vmin.xlane.f32.xlu2 %v1546_v10  ;;  %1562 = vmin.xlane.f32.xlu0 %v1561_v36  ;;  %v1540_v22 = vshll.u32 %v1539_v23, 16 }
0x15da   :  { %v1462_v37 = vpop.xlane.xlu1 %1461 }
0x15db   :  { %v1463_v44 = vcvt.f32.s32 %v1462_v37 }
0x15dd   :  { %v1466_v45 = vadd.s32 %v1465_v43, %v1463_v44  ;;  %1536 = vmin.xlane.f32.xlu0 %v1535_v61 }
0x15df   :  { %1573 = vst.msk [vmem:[%s2540_s8] sm:$0xff] %vm1572_vm7, %v1466_v45 }
0x15e2   :  { %v1507_v48 = vpop.xlane.xlu1 %1506 }
0x15e3   :  { %v1508_v55 = vcvt.f32.s32 %v1507_v48 }
0x15e5   :  { %v1511_v58 = vadd.s32 %v1510_v49, %v1508_v55 }
0x15e7   :  { %1576 = vst.msk [vmem:[%s2540_s8 + $0x18] sm:$0xff] %vm1572_vm7, %v1511_v58 }
0x15f1   :  { %1282 = vrot.lane.b32.xlu0 %v2353_v3, %s1960_s30 }
0x1638   :  { %v1477_v62 = vpop.xlane.xlu2 %1476 }
0x1639   :  { %v1478_v34 = vcvt.f32.s32 %v1477_v62 }
0x163b   :  { %v1481_v2 = vadd.s32 %v1480_v0, %v1478_v34 }
0x163d   :  { %1574 = vst.msk [vmem:[%s2540_s8 + $0x8] sm:$0xff] %vm1572_vm7, %v1481_v2 }
0x1640   :  { %v1522_v54 = vpop.xlane.xlu2 %1521  ;;  %v1492_v7 = vpop.xlane.xlu0 %1491 }
0x1641   :  { %v1523_v14 = vcvt.f32.s32 %v1522_v54  ;;  %v1493_v15 = vcvt.f32.s32 %v1492_v7 }
0x1643   :  { %v1526_v16 = vadd.s32 %v1525_v46, %v1523_v14  ;;  %v1496_v3 = vadd.s32 %v1495_v11, %v1493_v15 }
0x1645   :  { %1577 = vst.msk [vmem:[%s2540_s8 + $0x20] sm:$0xff] %vm1572_vm7, %v1526_v16 }
0x1646   :  { %1575 = vst.msk [vmem:[%s2540_s8 + $0x10] sm:$0xff] %vm1572_vm7, %v1496_v3 }
0x1648   :  { %v1548_v17 = vpop.xlane.xlu2 %1547  ;;  %v1563_v13 = vpop.xlane.xlu0 %1562 }
0x1649   :  { %vm1549_vm5 = vcmp.eq.f32.partialorder %v1546_v10, %v1548_v17  ;;  %vm1564_vm8 = vcmp.eq.f32.partialorder %v1561_v36, %v1563_v13  ;;  %v1554_v59 = vcvt.f32.s32 %v1548_v17  ;;  %v1569_v18 = vcvt.f32.s32 %v1563_v13 }
0x164a   :  { %v1550_v51 = vsel %vm1549_vm5, %v1545_v24, inf  ;;  %v1565_v26 = vsel %vm1564_vm8, %v1560_v50, inf }
0x164b   :  { %1551 = vmin.xlane.f32.xlu1 %v1550_v51  ;;  %1566 = vmin.xlane.f32.xlu2 %v1565_v26  ;;  %v1555_v31 = vshll.u32 %v1554_v59, 16  ;;  %v1570_v40 = vshll.u32 %v1569_v18, 16 }
0x1650   :  { %v1537_v27 = vpop.xlane.xlu0 %1536 }
0x1651   :  { %v1538_v28 = vcvt.f32.s32 %v1537_v27 }
0x1653   :  { %v1541_v30 = vadd.s32 %v1540_v22, %v1538_v28 }
0x1655   :  { %1578 = vst.msk [vmem:[%s2540_s8 + $0x28] sm:$0xff] %vm1572_vm7, %v1541_v30 }
0x1663   :  { %1294 = vrot.lane.b32.xlu2 %v2400_v12, %s1962_s22  ;;  %v1283_v39 = vpop.permute.xlu0 %1282 }
0x1664   :  { %1285 = vst.msk [vmem:[#allocation4] sm:$0xff] %vm95_vm0, %v1283_v39  ;;  %1287 = vrot.lane.b32.xlu1 %v2344_v19, %s1962_s22 }
0x1665   :  { %1597 = dma.vmem_to_hbm [thread:$0]  %s1590_s19, 256, %s1592_s21, [#allocation5], %s1963_s2, %s1963_s2, %s1964_s23  }
0x16be   :  { %v1567_v20 = vpop.xlane.xlu2 %1566  ;;  %v1552_v38 = vpop.xlane.xlu1 %1551 }
0x16bf   :  { %v1568_v41 = vcvt.f32.s32 %v1567_v20  ;;  %v1553_v52 = vcvt.f32.s32 %v1552_v38 }
0x16c1   :  { %v1571_v1 = vadd.s32 %v1570_v40, %v1568_v41  ;;  %v1556_v32 = vadd.s32 %v1555_v31, %v1553_v52 }
0x16c3   :  { %1580 = vst.msk [vmem:[%s2540_s8 + $0x38] sm:$0xff] %vm1572_vm7, %v1571_v1 }
0x16c4   :  { %1579 = vst.msk [vmem:[%s2540_s8 + $0x30] sm:$0xff] %vm1572_vm7, %v1556_v32 }
0x16c6   :  { %v1295_v19 = vpop.permute.xlu2 %1294 }
0x16c7   :  { %1298 = vst.msk [vmem:[#allocation6 + $0x8] sm:$0xff] %vm95_vm0, %v1295_v19 }
0x16d6   :  { %v1288_v12 = vpop.permute.xlu1 %1287 }
0x16d7   :  { %1290 = vst.msk [vmem:[#allocation6] sm:$0xff] %vm95_vm0, %v1288_v12 }
0x16d8   :  { %1610 = dma.vmem_to_hbm [thread:$0]  %s1603_s0, 256, %s1605_s28, [#allocation7], %s1963_s2, %s1963_s2, %s1964_s23  }
0x16d9   :  { %1955 = dma.done.wait [#allocation5], 256  }
0x16da   :  { %1956 = vsyncadd [#allocation5], 4294967040 }
0x16db   :  { %1957 = dma.done.wait [#allocation7], 256  }
0x16dc   :  { %1958 = vsyncadd [#allocation7], 4294967040 }
0x16dd   :  { %1623 = vsyncpa [#allocation5], 1 }
0x16de   :  { %1624 = vsyncpa [#allocation7], 1 }

</bundles_post_ra>
